<compile_context>
chip_gen: v7x
topology: tpu7x:2x2x1
jax: 0.10.0
libtpu: 0.0.40
codegen_flags: <defaults>
</compile_context>

<pallas_src>
import functools

import jax
import jax.numpy as jnp
from jax import lax
from jax.experimental import pallas as pl
from jax.experimental.pallas import tpu as pltpu


# ---------------- helpers ----------------

def _round_up(a, b):
    return (a + b - 1) // b * b


def _cdiv(a, b):
    return (a + b - 1) // b


def _vmem_limit_bytes():
    """~3/4 of physical per-TensorCore VMEM; conservative 48 MiB fallback."""
    cap = 64 * 1024 * 1024          # v7x physical (smallest of v5e/v6e/v7x)
    try:
        info = pltpu.get_tpu_info()
        cap = int(getattr(info, "vmem_capacity_bytes", cap) or cap)
    except Exception:
        pass
    return (cap * 3) // 4


# ---------------- kernels ----------------

def _hex_pool_fused_kernel(sel_ref, x_ref, val_ref, idx_ref, *, tl, K):
    # sel_ref: SMEM [L_pad*K] int32 (scalar-prefetched hex, row-major [row, slot])
    # x_ref  : VMEM [N, tc]  resident across the L grid axis (32-bit rows)
    # val_ref: VMEM [tl, tc] max over the 7 hex slots
    # idx_ref: VMEM [tl, tc] int32 vertex id achieving the max (per channel)
    tc = val_ref.shape[1]
    row0 = pl.program_id(1) * tl            # grid = (C blocks, L blocks)

    def body(r, carry):
        base = (row0 + r) * K
        vid0 = sel_ref[base]
        best_val = x_ref[pl.ds(vid0, 1), :].astype(jnp.float32)     # [1, tc]
        best_idx = jnp.full((1, tc), vid0, dtype=jnp.int32)
        for k in range(1, K):                # static 7-way unroll
            vid = sel_ref[base + k]
            cur = x_ref[pl.ds(vid, 1), :].astype(jnp.float32)
            better = cur > best_val          # strict '>' == argmax first-occurrence
            best_val = jnp.where(better, cur, best_val)
            best_idx = jnp.where(better, jnp.full((1, tc), vid, jnp.int32),
                                 best_idx)
        val_ref[pl.ds(r, 1), :] = best_val.astype(val_ref.dtype)
        idx_ref[pl.ds(r, 1), :] = best_idx
        return carry

    lax.fori_loop(0, tl, body, 0, unroll=8)


def _hex_pool_block_kernel(yg_ref, hex_ref, val_ref, idx_ref):
    # Unfused fallback: yg_ref [K, tl, tc] pre-gathered features, hex_ref [tl, K].
    K = yg_ref.shape[0]
    best_val = yg_ref[0].astype(jnp.float32)
    best_idx = jnp.broadcast_to(hex_ref[:, 0:1], best_val.shape)
    for k in range(1, K):                    # static unroll, pure VPU select
        cur = yg_ref[k].astype(jnp.float32)
        cur_idx = jnp.broadcast_to(hex_ref[:, k:k + 1], cur.shape)
        better = cur > best_val
        best_val = jnp.where(better, cur, best_val)
        best_idx = jnp.where(better, cur_idx, best_idx)
    val_ref[...] = best_val.astype(val_ref.dtype)
    idx_ref[...] = best_idx


# ---------------- wrapper ----------------

def hex_pooling_2_forward(x, hex_idx, *, tl=256, tc_max=512, fuse=None):
    """hex_pooling_2.forward.

    x       : [N, ...] vertex features (float; bf16 kept bf16 on the HBM side)
    hex_idx : [N, 7]   int hexagon-neighborhood table
    returns (pooled_values [L, C] x.dtype, pooled_vertex_ids [L, C] int32)
    with L = (N + 6) // 4.
    # TODO(synk): PyTorch returns int64 vertex ids; int32 is returned here
    # (all ico meshes have far fewer than 2^31 vertices).
    """
    N, K = hex_idx.shape
    x2 = x.reshape(N, -1)                    # original: x.reshape(len(hex), -1)
    C = x2.shape[1]
    L = (N + 6) // 4

    dtype = x2.dtype
    itemsize = jnp.dtype(dtype).itemsize
    sub_mult = max(8, 32 // min(itemsize, 4))          # 8 for f32, 16 for bf16

    # --- channel blocking: lane-dense multiples of 128 ---
    C_pad = _round_up(C, 128)
    tc = 128
    for cand in range(min(tc_max, C_pad), 127, -128):
        if C_pad % cand == 0:
            tc = cand
            break
    x_p = x2 if C_pad == C else jnp.pad(x2, ((0, 0), (0, C_pad - C)))

    # --- vertex (L) blocking: >=2 grid tiles when possible (v7x megacore) ---
    vmem_limit = _vmem_limit_bytes()
    l_cap = _round_up(_cdiv(L, 2), sub_mult) if L > sub_mult else _round_up(L, sub_mult)
    tl = max(sub_mult, min(_round_up(tl, sub_mult), l_cap))

    def _unfused_step_bytes(t):              # double-buffered working set
        return (2 * K * t * tc * itemsize            # yg blocks
                + 2 * t * 128 * 4                    # hex block (lane-padded)
                + 2 * t * tc * (itemsize + 4))       # val + idx blocks
    while tl > sub_mult and _unfused_step_bytes(tl) > vmem_limit // 2:
        tl = max(sub_mult, _round_up(tl // 2, sub_mult))

    L_pad = _round_up(L, tl)
    grid = (C_pad // tc, L_pad // tl)

    # hex table for the first L (coarse) vertices, padded to L_pad rows.
    sel = hex_idx[:L].astype(jnp.int32)
    if L_pad > L:                            # pad rows gather x[0]; sliced off
        sel = jnp.concatenate([sel, jnp.zeros((L_pad - L, K), jnp.int32)], axis=0)

    out_shape = (jax.ShapeDtypeStruct((L_pad, C_pad), dtype),
                 jax.ShapeDtypeStruct((L_pad, C_pad), jnp.int32))
    out_bytes = L_pad * C_pad * (itemsize + 4)
    cparams = pltpu.CompilerParams(dimension_semantics=("parallel", "parallel"),
                                   vmem_limit_bytes=vmem_limit)

    # --- fused-path feasibility: x resident in VMEM as 32-bit rows ---
    fused_resident = 2 * N * tc * 4                  # x block (worst-case 2 buffers)
    fused_blocks = 2 * tl * tc * (itemsize + 4)      # val + idx blocks
    smem_ok = 4 * L_pad * K <= (1 << 18)             # keep SMEM hex table modest
    fuse_ok = smem_ok and (fused_resident + fused_blocks) <= (vmem_limit * 9) // 10
    fuse = fuse_ok if fuse is None else (bool(fuse) and fuse_ok)

    def _run_unfused():
        # XLA gathers yg directly in [K, L_pad, C_pad] layout (leading
        # reduction axis -> pure VPU select in-kernel, no transpose pass),
        # preserving x.dtype (bf16 halves the dominant HBM term).
        yg = x_p[sel.T]
        cost = pl.CostEstimate(
            flops=3 * K * L_pad * C_pad, transcendentals=0,
            bytes_accessed=yg.size * itemsize + sel.size * 4 + out_bytes)
        return pl.pallas_call(
            _hex_pool_block_kernel,
            out_shape=out_shape,
            grid=grid,
            in_specs=[pl.BlockSpec((K, tl, tc), lambda c, l: (0, l, c)),
                      pl.BlockSpec((tl, K), lambda c, l: (l, 0))],
            out_specs=(pl.BlockSpec((tl, tc), lambda c, l: (l, c)),
                       pl.BlockSpec((tl, tc), lambda c, l: (l, c))),
            compiler_params=cparams,
            cost_estimate=cost,
        )(yg, sel)

    def _run_fused():
        # TODO(synk): the in-kernel dynamic row gather keeps x rows 32-bit
        # (dynamic sublane offsets on packed bf16 layouts are not relied on),
        # so sub-32-bit features are upcast for the VMEM-resident copy only.
        x_f = x_p if itemsize >= 4 else x_p.astype(jnp.float32)
        sel_flat = sel.reshape(-1)
        cost = pl.CostEstimate(
            flops=3 * K * L_pad * C_pad, transcendentals=0,
            bytes_accessed=x_f.size * x_f.dtype.itemsize + sel_flat.size * 4
            + out_bytes)
        kernel = functools.partial(_hex_pool_fused_kernel, tl=tl, K=K)
        return pl.pallas_call(
            kernel,
            out_shape=out_shape,
            grid_spec=pltpu.PrefetchScalarGridSpec(
                num_scalar_prefetch=1,
                grid=grid,
                in_specs=[pl.BlockSpec((N, tc), lambda c, l, s: (0, c))],
                out_specs=(pl.BlockSpec((tl, tc), lambda c, l, s: (l, c)),
                           pl.BlockSpec((tl, tc), lambda c, l, s: (l, c)))),
            compiler_params=cparams,
            cost_estimate=cost,
        )(sel_flat, x_f)

    if fuse:
        try:
            vals, idx = _run_fused()
        except Exception:
            # Defensive: if a particular Mosaic version rejects the in-kernel
            # dynamic row gather, keep the module functional via the
            # (slower, HBM-materialized) unfused path.
            vals, idx = _run_unfused()
    else:
        vals, idx = _run_unfused()

    return vals[:L, :C], idx[:L, :C]


# ---------------- demo / correctness check ----------------

if __name__ == "__main__":
    key = jax.random.PRNGKey(0)
    ICO_N = 642                 # ico level-3 sphere: 10*4^3 + 2 vertices
    C = 128                     # lane-dense feature width
    L = (ICO_N + 6) // 4        # = 162 coarse vertices

    k1, k2 = jax.random.split(key, 2)
    x = jax.random.normal(k1, (ICO_N, C), dtype=jnp.float32)

    # TODO(synk): hexagon tables come from data/hexagons_*.npy in the original
    # code; synthesized deterministically here (column 0 = the vertex itself).
    hnbrs = jax.random.randint(k2, (ICO_N, 6), 0, ICO_N, dtype=jnp.int32)
    hex_idx = jnp.concatenate(
        [jnp.arange(ICO_N, dtype=jnp.int32)[:, None], hnbrs], axis=1)

    def reference(xv):
        g = xv[hex_idx]                                  # [N, 7, C]
        vals_r = jnp.max(g, axis=1)[:L]
        arg_r = jnp.argmax(g, axis=1)[:L]
        idx_r = jnp.take_along_axis(hex_idx[:L], arg_r, axis=1)
        return vals_r, idx_r

    # 1) default (fused) path: in-kernel gather, x resident in VMEM, f32.
    vals, idx = hex_pooling_2_forward(x, hex_idx)
    vals, idx = jax.block_until_ready((vals, idx))
    vr, ir = reference(x)
    assert vals.shape == (L, C) and idx.shape == (L, C)
    assert jnp.allclose(vals, vr, atol=1e-6, rtol=1e-6)
    assert jnp.array_equal(idx, ir)

    # 2) unfused fallback path with bf16 features kept bf16 end to end.
    xb = x.astype(jnp.bfloat16)
    vals_b, idx_b = hex_pooling_2_forward(xb, hex_idx, fuse=False)
    vals_b, idx_b = jax.block_until_ready((vals_b, idx_b))
    vrb, irb = reference(xb)
    assert vals_b.dtype == jnp.bfloat16
    assert jnp.array_equal(vals_b, vrb)
    assert jnp.array_equal(idx_b, irb)

    print("KERNEL_OK")
</pallas_src>

<mosaic_0001>
module attributes {stable_mosaic.version = 11 : i64} {
  func.func @_hex_pool_block_kernel(%arg0: i32, %arg1: i32, %arg2: memref<7x88x128xf32, #tpu.memory_space<vmem>>, %arg3: memref<88x7xi32, #tpu.memory_space<vmem>>, %arg4: memref<88x128xf32, #tpu.memory_space<vmem>>, %arg5: memref<88x128xi32, #tpu.memory_space<vmem>>) attributes {dimension_semantics = [#tpu.dimension_semantics<parallel>, #tpu.dimension_semantics<parallel>], iteration_bounds = array<i64: 1, 2>, scalar_prefetch = 0 : i64, scratch_operands = 0 : i64, tpu.core_type = #tpu.core_type<tc>, window_params = [{transform_indices = @transform_0, window_bounds = array<i64: 7, 88, 128>}, {transform_indices = @transform_1, window_bounds = array<i64: 88, 7>}, {transform_indices = @transform_2, window_bounds = array<i64: 88, 128>}, {transform_indices = @transform_3, window_bounds = array<i64: 88, 128>}]} {
    %c0 = arith.constant 0 : index
    %c0_0 = arith.constant 0 : index
    %c0_1 = arith.constant 0 : index
    %0 = vector.load %arg2[%c0, %c0_0, %c0_1] : memref<7x88x128xf32, #tpu.memory_space<vmem>>, vector<1x88x128xf32>
    %1 = vector.shape_cast %0 : vector<1x88x128xf32> to vector<88x128xf32>
    %c0_2 = arith.constant 0 : index
    %c0_3 = arith.constant 0 : index
    %2 = vector.load %arg3[%c0_2, %c0_3] : memref<88x7xi32, #tpu.memory_space<vmem>>, vector<88x1xi32>
    %3 = vector.shape_cast %2 : vector<88x1xi32> to vector<88x1xi32>
    %4 = vector.broadcast %3 : vector<88x1xi32> to vector<88x128xi32>
    %c1 = arith.constant 1 : index
    %c0_4 = arith.constant 0 : index
    %c0_5 = arith.constant 0 : index
    %5 = vector.load %arg2[%c1, %c0_4, %c0_5] : memref<7x88x128xf32, #tpu.memory_space<vmem>>, vector<1x88x128xf32>
    %6 = vector.shape_cast %5 : vector<1x88x128xf32> to vector<88x128xf32>
    %c0_6 = arith.constant 0 : index
    %c1_7 = arith.constant 1 : index
    %7 = vector.load %arg3[%c0_6, %c1_7] : memref<88x7xi32, #tpu.memory_space<vmem>>, vector<88x1xi32>
    %8 = vector.shape_cast %7 : vector<88x1xi32> to vector<88x1xi32>
    %9 = vector.broadcast %8 : vector<88x1xi32> to vector<88x128xi32>
    %10 = arith.cmpf ogt, %6, %1 : vector<88x128xf32>
    %11 = arith.select %10, %6, %1 : vector<88x128xi1>, vector<88x128xf32>
    %12 = arith.select %10, %9, %4 : vector<88x128xi1>, vector<88x128xi32>
    %c2 = arith.constant 2 : index
    %c0_8 = arith.constant 0 : index
    %c0_9 = arith.constant 0 : index
    %13 = vector.load %arg2[%c2, %c0_8, %c0_9] : memref<7x88x128xf32, #tpu.memory_space<vmem>>, vector<1x88x128xf32>
    %14 = vector.shape_cast %13 : vector<1x88x128xf32> to vector<88x128xf32>
    %c0_10 = arith.constant 0 : index
    %c2_11 = arith.constant 2 : index
    %15 = vector.load %arg3[%c0_10, %c2_11] : memref<88x7xi32, #tpu.memory_space<vmem>>, vector<88x1xi32>
    %16 = vector.shape_cast %15 : vector<88x1xi32> to vector<88x1xi32>
    %17 = vector.broadcast %16 : vector<88x1xi32> to vector<88x128xi32>
    %18 = arith.cmpf ogt, %14, %11 : vector<88x128xf32>
    %19 = arith.select %18, %14, %11 : vector<88x128xi1>, vector<88x128xf32>
    %20 = arith.select %18, %17, %12 : vector<88x128xi1>, vector<88x128xi32>
    %c3 = arith.constant 3 : index
    %c0_12 = arith.constant 0 : index
    %c0_13 = arith.constant 0 : index
    %21 = vector.load %arg2[%c3, %c0_12, %c0_13] : memref<7x88x128xf32, #tpu.memory_space<vmem>>, vector<1x88x128xf32>
    %22 = vector.shape_cast %21 : vector<1x88x128xf32> to vector<88x128xf32>
    %c0_14 = arith.constant 0 : index
    %c3_15 = arith.constant 3 : index
    %23 = vector.load %arg3[%c0_14, %c3_15] : memref<88x7xi32, #tpu.memory_space<vmem>>, vector<88x1xi32>
    %24 = vector.shape_cast %23 : vector<88x1xi32> to vector<88x1xi32>
    %25 = vector.broadcast %24 : vector<88x1xi32> to vector<88x128xi32>
    %26 = arith.cmpf ogt, %22, %19 : vector<88x128xf32>
    %27 = arith.select %26, %22, %19 : vector<88x128xi1>, vector<88x128xf32>
    %28 = arith.select %26, %25, %20 : vector<88x128xi1>, vector<88x128xi32>
    %c4 = arith.constant 4 : index
    %c0_16 = arith.constant 0 : index
    %c0_17 = arith.constant 0 : index
    %29 = vector.load %arg2[%c4, %c0_16, %c0_17] : memref<7x88x128xf32, #tpu.memory_space<vmem>>, vector<1x88x128xf32>
    %30 = vector.shape_cast %29 : vector<1x88x128xf32> to vector<88x128xf32>
    %c0_18 = arith.constant 0 : index
    %c4_19 = arith.constant 4 : index
    %31 = vector.load %arg3[%c0_18, %c4_19] : memref<88x7xi32, #tpu.memory_space<vmem>>, vector<88x1xi32>
    %32 = vector.shape_cast %31 : vector<88x1xi32> to vector<88x1xi32>
    %33 = vector.broadcast %32 : vector<88x1xi32> to vector<88x128xi32>
    %34 = arith.cmpf ogt, %30, %27 : vector<88x128xf32>
    %35 = arith.select %34, %30, %27 : vector<88x128xi1>, vector<88x128xf32>
    %36 = arith.select %34, %33, %28 : vector<88x128xi1>, vector<88x128xi32>
    %c5 = arith.constant 5 : index
    %c0_20 = arith.constant 0 : index
    %c0_21 = arith.constant 0 : index
    %37 = vector.load %arg2[%c5, %c0_20, %c0_21] : memref<7x88x128xf32, #tpu.memory_space<vmem>>, vector<1x88x128xf32>
    %38 = vector.shape_cast %37 : vector<1x88x128xf32> to vector<88x128xf32>
    %c0_22 = arith.constant 0 : index
    %c5_23 = arith.constant 5 : index
    %39 = vector.load %arg3[%c0_22, %c5_23] : memref<88x7xi32, #tpu.memory_space<vmem>>, vector<88x1xi32>
    %40 = vector.shape_cast %39 : vector<88x1xi32> to vector<88x1xi32>
    %41 = vector.broadcast %40 : vector<88x1xi32> to vector<88x128xi32>
    %42 = arith.cmpf ogt, %38, %35 : vector<88x128xf32>
    %43 = arith.select %42, %38, %35 : vector<88x128xi1>, vector<88x128xf32>
    %44 = arith.select %42, %41, %36 : vector<88x128xi1>, vector<88x128xi32>
    %c6 = arith.constant 6 : index
    %c0_24 = arith.constant 0 : index
    %c0_25 = arith.constant 0 : index
    %45 = vector.load %arg2[%c6, %c0_24, %c0_25] : memref<7x88x128xf32, #tpu.memory_space<vmem>>, vector<1x88x128xf32>
    %46 = vector.shape_cast %45 : vector<1x88x128xf32> to vector<88x128xf32>
    %c0_26 = arith.constant 0 : index
    %c6_27 = arith.constant 6 : index
    %47 = vector.load %arg3[%c0_26, %c6_27] : memref<88x7xi32, #tpu.memory_space<vmem>>, vector<88x1xi32>
    %48 = vector.shape_cast %47 : vector<88x1xi32> to vector<88x1xi32>
    %49 = vector.broadcast %48 : vector<88x1xi32> to vector<88x128xi32>
    %50 = arith.cmpf ogt, %46, %43 : vector<88x128xf32>
    %51 = arith.select %50, %46, %43 : vector<88x128xi1>, vector<88x128xf32>
    %52 = arith.select %50, %49, %44 : vector<88x128xi1>, vector<88x128xi32>
    %c0_28 = arith.constant 0 : index
    %c0_29 = arith.constant 0 : index
    %53 = vector.load %arg4[%c0_28, %c0_29] : memref<88x128xf32, #tpu.memory_space<vmem>>, vector<88x128xf32>
    tpu.vector_store %arg4[%c0_28, %c0_29], %51 {strides = array<i32>} : memref<88x128xf32, #tpu.memory_space<vmem>>, vector<88x128xf32>,
    %c0_30 = arith.constant 0 : index
    %c0_31 = arith.constant 0 : index
    %54 = vector.load %arg5[%c0_30, %c0_31] : memref<88x128xi32, #tpu.memory_space<vmem>>, vector<88x128xi32>
    tpu.vector_store %arg5[%c0_30, %c0_31], %52 {strides = array<i32>} : memref<88x128xi32, #tpu.memory_space<vmem>>, vector<88x128xi32>,
    return
  }
  func.func @transform_0(%arg0: i32, %arg1: i32) -> (i32, i32, i32) {
    %c0_i32 = arith.constant 0 : i32
    %c0_i32_0 = arith.constant 0 : i32
    return %c0_i32, %arg1, %arg0 : i32, i32, i32
  }
  func.func @transform_1(%arg0: i32, %arg1: i32) -> (i32, i32) {
    %c0_i32 = arith.constant 0 : i32
    %c0_i32_0 = arith.constant 0 : i32
    return %arg1, %c0_i32 : i32, i32
  }
  func.func @transform_2(%arg0: i32, %arg1: i32) -> (i32, i32) {
    %c0_i32 = arith.constant 0 : i32
    return %arg1, %arg0 : i32, i32
  }
  func.func @transform_3(%arg0: i32, %arg1: i32) -> (i32, i32) {
    %c0_i32 = arith.constant 0 : i32
    return %arg1, %arg0 : i32, i32
  }
}

</mosaic_0001>

<bundles_post_ra>
// kernel: tpu_custom_call.1
= control target key start
LH: loop header
LB: loop body
LE: loop exit
PB: predicated region body
PF: predicated region fallthrough
CT: control target
= control target key end

     0   :  { %9 = vsyncpa [#allocation3], 0  ;;  %s2736_s0 = inlined_call_operand.hbm [shape: f32[7,176,128], index: 0, kind: input, shape index: {}]   ;;  %s2737_s1 = inlined_call_operand.vmem [shape: s32[176,7], index: 1, kind: input, shape index: {}]   ;;  %s2738_s2 = inlined_call_operand.hbm [shape: f32[176,128], index: 2, kind: output, shape index: {0}]   ;;  %s2739_s3 = inlined_call_operand.hbm [shape: s32[176,128], index: 3, kind: output, shape index: {1}]  }
   0x1   :  { %11 = vsyncpa [#allocation3 + $0x1], 0 }
   0x2   :  { %12 = vsyncpa [#allocation4], 0 }
   0x3   :  { %14 = vsyncpa [#allocation4 + $0x1], 0 }
   0x4   :  { %15 = vsyncpa [#allocation7], 0 }
   0x5   :  { %17 = vsyncpa [#allocation7 + $0x1], 0  ;;  %s1318_s12 = smov 0   ;;  %s1320_s13 = smov 0  }
   0x6   :  { %s1322_s14 = smov 0   ;;  %s1324_s15 = smov 0  }
   0x7   :  { %s1326_s16 = smov 0   ;;  %s1328_s17 = smov 0  }
   0x8 LB: > { %s982_s18 = sadd.s32 4294967295, %s1279_s17   ;;  %s983_s19 = sadd.s32 4294967294, %s1279_s17   ;;  %s1279_s17 = sphi %s1328_s17, %s23_s17   ;;  %s1275_s16 = sphi %s1326_s16, %s3083_s16   ;;  %s1271_s15 = sphi %s1324_s15, %s3082_s15   ;;  %s1267_s14 = sphi %s1322_s14, %s3081_s14   ;;  %s1263_s13 = sphi %s1320_s13, %s3080_s13   ;;  %s1259_s12 = sphi %s1318_s12, %s3079_s12  }
   0x9   : > { %s32_s20 = sadd.s32 1, %s1275_s16  ;;  %s44_s21 = sadd.s32 1, %s1267_s14 }
   0xa   : > { %p33_p0 = scmp.ge.s32.totalorder %s32_s20, 2  ;;  %p51_p1 = scmp.ne.s32.totalorder %s1267_s14, %s1263_s13 }
   0xb   : > { %p52_p2 = scmp.eq.s32.totalorder %s1279_s17, 0  ;;  %p57_p3 = scmp.ne.s32.totalorder %s1263_s13, %s1259_s12 }
   0xc   : > { %s3085_s20 = smov (%p33_p0, %s32_s20), 0  ;;  %p58_p5 = scmp.eq.s32.totalorder %s982_s18, 0 }
   0xd   : > { %p1359_p4 = por %p52_p2, %p51_p1  ;;  %s39_s23 = ssub.s32 %s1275_s16, %s3085_s20 }
   0xe   : > { %p109_p6 = scmp.eq.s32.totalorder %s982_s18, 1  ;;  %p42_p7 = scmp.eq.s32.totalorder %s39_s23, 0 }
   0xf   : > { %p1365_p8 = por %p58_p5, %p57_p3  ;;  %p115_p10 = scmp.eq.s32.totalorder %s983_s19, 1 }
  0x10   : > { %p1369_p9 = por %p109_p6, %p51_p1  ;;  %p985_p12 = scmp.ge.s32.totalorder %s1279_s17, 2 }
  0x11   : > { %s1374_s26 = scalar_select %p42_p7, %s1267_s14, %s44_s21  }
  0x12   : > { %p1376_p11 = por %p115_p10, %p57_p3  ;;  %159 = sbr.rel (%p985_p12) target bundleno = 39 (0x27), region = 16 }
  0x19   : > { %s163_s28 = sand.u32 1, %s1267_s14   ;;  %s1061_s29 = smul.u32 1408, %s1275_s16 }
  0x1a   : > { %s1064_s30 = smul.u32 616, %s163_s28  ;;  %s1281_s4 = smov 2816  }
  0x1b   : > { %1068 = sst [smem:[#allocation9]] (%p1359_p4), %s1281_s4  ;;  %s174_s8 = scalar_lea.hbm %s2736_s0, %s1061_s29 }
  0x1c   : > { %s1067_s5 = scalar_select %p1359_p4, [#allocation0], [#allocation10] }
  0x1d   : > { %s167_s10 = scalar_lea.vmem [#allocation2], %s1064_s30  ;;  %s1282_s18 = smov 1408  }
  0x1e   : > { %s179_s9 = sld [smem:[%s1067_s5]]   ;;  %s187_s11 = sshll.u32 %s167_s10, 4  ;;  %s188_s11 = int_to_ptr.vmem [resolvable:$true] %s187_s11 }
  0x1f   : > { %1069 = sst [smem:[#allocation9 + $0x1]] (%p1359_p4), %s1282_s18  ;;  %s1283_s19 = smov 11  }
  0x20   : > { %1070 = sst [smem:[#allocation9 + $0x2]] (%p1359_p4), %s1283_s19  ;;  %s1284_s21 = smov 128  }
  0x21   : > { %1071 = sst [smem:[#allocation9 + $0x3]] (%p1359_p4), %s1284_s21  ;;  %s1285_s23 = smov 8  }
  0x22   : > { %1072 = sst [smem:[#allocation9 + $0x4]] (%p1359_p4), %s1284_s21  ;;  %s164_s30 = scalar_lea.sflag [#allocation3], %s163_s28 }
  0x23   : > { %1073 = sst [smem:[#allocation9 + $0x5]] (%p1359_p4), %s1285_s23  ;;  %s1286_s5 = smov [#allocation8]  }
  0x24   : > { %s987_s29 = sshll.u32 %s179_s9, 26 }
  0x25   : > { %s988_s4 = sadd.s32 134217728, %s987_s29 }
  0x26   : > { %1074 = dma.general (%p1359_p4), %s174_s8, 9856, %s188_s11, %s164_s30, %s1286_s5, [#allocation9], %s988_s4, 0  }
  0x27 PF: > { %p989_p13 = scmp.ge.s32.totalorder %s1279_s17, 1  ;;  %p217_p0 = scmp.lt.s32.totalorder %s1279_s17, 3 }
  0x29   : > { %p218_p1 = pnand %p989_p13, %p217_p0 }
  0x2b   : > { %221 = sbr.rel (%p218_p1) target bundleno = 377 (0x179), region = 28 }
  0x32   : > { %s1407_s6 = sand.u32 1, %s1263_s13  }
  0x33   : > { %s1065_s7 = smul.u32 616, %s1407_s6  ;;  %s224_s9 = scalar_lea.sflag [#allocation3], %s1407_s6 }
  0x35   : > { %s1411_s10 = scalar_lea.vmem [#allocation2], %s1065_s7 }
  0x36   : > { %1246 = dma.done.wait (%p1365_p8), %s224_s9, 9856  }
  0x37   : > { %1248 = vsyncadd (%p1365_p8), %s224_s9, 4294957440  ;;  %s261_s22 = smul.u32 11, %s1271_s15  ;;  %v1287_v0 = vmov 0   ;;  %v1288_v12 = vmov 1   ;;  %v1289_v13 = vmov 2   ;;  %v1290_v14 = vmov 3  }
  0x38   : > { %1152 = vset.pattern.permute.xlu1 %v1287_v0  ;;  %1151 = vset.pattern.permute.xlu0 %v1287_v0  ;;  %v1291_v15 = vmov 4   ;;  %v1292_v16 = vmov 5   ;;  %v1497_v17 = vld [vmem:[%s1411_s10 + $0x60] sm:$0xff]  ;;  %v1500_v18 = vld [vmem:[%s1411_s10 + $0x8] sm:$0xff]  ;;  %v1507_v19 = vld [vmem:[%s1411_s10 + $0x78] sm:$0xff]  ;;  %s1066_s24 = smul.u32 88, %s1407_s6 }
  0x39   : > { %p262_p2 = scmp.lt.s32.totalorder %s261_s22, 21  ;;  %vm370_vm0 = vcmp.gt.f32.partialorder %v1497_v17, %v1500_v18  ;;  %v1510_v20 = vld [vmem:[%s1411_s10 + $0x20] sm:$0xff]  ;;  %v1513_v21 = vld [vmem:[%s1411_s10 + $0xb8] sm:$0xff]  ;;  %v1526_v23 = vld [vmem:[%s1411_s10 + $0x88] sm:$0xff]  ;;  %s1062_s21 = smul.u32 1408, %s1271_s15 }
  0x3a   : > { %v1520_v22 = vsel %vm370_vm0, %v1497_v17, %v1500_v18  ;;  %vm373_vm1 = vcmp.gt.f32.partialorder %v1507_v19, %v1510_v20  ;;  %v1532_v24 = vld [vmem:[%s1411_s10 + $0x30] sm:$0xff]  ;;  %v1558_v29 = vld [vmem:[%s1411_s10 + $0x98] sm:$0xff]  ;;  %v1561_v30 = vld [vmem:[%s1411_s10 + $0x40] sm:$0xff]  ;;  %s1801_s19 = scalar_lea.vmem [#allocation5], %s1066_s24  ;;  %s815_s5 = scalar_lea.sflag [#allocation4], %s1407_s6 }
  0x3b   : > { %s3087_s22 = smov (!%p262_p2, %s261_s22), 21  ;;  %vm2815_vm2 = vcmp.gt.f32.partialorder %v1513_v21, %v1520_v22  ;;  %v1535_v25 = vld [vmem:[%s1411_s10 + $0xd0] sm:$0xff]  ;;  %v1542_v26 = vsel %vm373_vm1, %v1507_v19, %v1510_v20  ;;  %vm375_vm3 = vcmp.gt.f32.partialorder %v1526_v23, %v1532_v24  ;;  %v1568_v31 = vld [vmem:[%s1411_s10 + $0xe0] sm:$0xff]  ;;  %v1578_v33 = vld [vmem:[%s1411_s10 + $0x128] sm:$0xff]  ;;  %vm377_vm6 = vcmp.gt.f32.partialorder %v1558_v29, %v1561_v30  ;;  %s834_s23 = sshll.u32 %s1801_s19, 4  ;;  %s2422_s23 = int_to_ptr.vmem [resolvable:$true] %s834_s23 }
  0x3c   : > { %s990_s28 = sshll.u32 %s3087_s22, 3  ;;  %2870 = vst [vmem:[#allocation14_spill] sm:$0xff] %v1535_v25  ;;  %2871 = vst [vmem:[#allocation15_spill] sm:$0xff] %v1542_v26  ;;  %v1545_v27 = vld [vmem:[%s1411_s10 + $0x110] sm:$0xff]  ;;  %v1552_v28 = vsel %vm2815_vm2, %v1513_v21, %v1520_v22  ;;  %vm2792_vm4 = vcmp.gt.f32.partialorder %v1535_v25, %v1542_v26  ;;  %v1575_v32 = vsel %vm375_vm3, %v1526_v23, %v1532_v24  ;;  %v1588_v35 = vld [vmem:[%s1411_s10 + $0x168] sm:$0xff]  ;;  %s2420_s30 = scalar_lea.hbm %s2738_s2, %s1062_s21 }
  0x3d   : > { %s265_s18 = scalar_lea.vmem %s2737_s1, %s990_s28  ;;  %2872 = vst [vmem:[#allocation16_spill] sm:$0xff] %v1545_v27  ;;  %2873 = vst [vmem:[#allocation17_spill] sm:$0xff] %v1552_v28  ;;  %vm2751_vm5 = vcmp.gt.f32.partialorder %v1545_v27, %v1552_v28  ;;  %v1585_v34 = vsel %vm2792_vm4, %v1535_v25, %v1542_v26  ;;  %v1600_v37 = vld [vmem:[%s1411_s10 + $0x58] sm:$0xff]  ;;  %v1603_v38 = vld [vmem:[%s1411_s10] sm:$0xff]  ;;  %vm2773_vm7 = vcmp.gt.f32.partialorder %v1568_v31, %v1575_v32  ;;  %s1165_s7 = scalar_lea.vmem %s2422_s23, 1408 }
  0x3e   : > { %v1421_v1 = vld [vmem:[%s265_s18 + $0x10] sm:$0xff]  ;;  %v1423_v2 = vld [vmem:[%s265_s18] sm:$0xff]  ;;  %v1427_v3 = vld [vmem:[%s265_s18 + $0x18] sm:$0xff]  ;;  %2874 = vst [vmem:[#allocation18_spill] sm:$0xff] %v1568_v31  ;;  %v1595_v36 = vsel %vm2751_vm5, %v1545_v27, %v1552_v28  ;;  %v1623_v42 = vsel %vm377_vm6, %v1558_v29, %v1561_v30  ;;  %vm2742_vm8 = vcmp.gt.f32.partialorder %v1578_v33, %v1585_v34  ;;  %v1637_v44 = vsel %vm2773_vm7, %v1568_v31, %v1575_v32  ;;  %p1166_p3 = scmp.ne.s32.totalorder %s2422_s23, %s1165_s7  ;;  %s1294_s9 = smov [#allocation5]  }
  0x3f   : > { %298 = vperm.xlu1 %1152, %v1421_v1   ;;  %292 = vperm.xlu0 %1151, %v1423_v2   ;;  %v1429_v4 = vld [vmem:[%s265_s18 + $0x8] sm:$0xff]  ;;  %v1435_v6 = vld [vmem:[%s265_s18 + $0x20] sm:$0xff]  ;;  %v1439_v7 = vld [vmem:[%s265_s18 + $0x38] sm:$0xff]  ;;  %2875 = vst [vmem:[#allocation19_spill] sm:$0xff] %v1575_v32  ;;  %vm2748_vm9 = vcmp.gt.f32.partialorder %v1588_v35, %v1595_v36  ;;  %v1647_v46 = vsel %vm2742_vm8, %v1578_v33, %v1585_v34 }
  0x40   : > { %v1433_v5 = vld [vmem:[%s265_s18 + $0x28] sm:$0xff]  ;;  %v1441_v8 = vld [vmem:[%s265_s18 + $0x30] sm:$0xff]  ;;  %v1447_v10 = vld [vmem:[%s265_s18 + $0x40] sm:$0xff]  ;;  %2876 = vst [vmem:[#allocation20_spill] sm:$0xff] %v1578_v33  ;;  %v1657_v48 = vsel %vm2748_vm9, %v1588_v35, %v1595_v36  ;;  %vm369_vm10 = vcmp.gt.f32.partialorder %v1600_v37, %v1603_v38  ;;  %p1167_p4 = pnand %p1166_p3, %p1369_p9 }
  0x41   : > { %v1445_v9 = vld [vmem:[%s265_s18 + $0x48] sm:$0xff]  ;;  %v1451_v11 = vld [vmem:[%s265_s18 + $0x50] sm:$0xff]  ;;  %2877 = vst [vmem:[#allocation21_spill] sm:$0xff] %v1585_v34  ;;  %2878 = vst [vmem:[#allocation22_spill] sm:$0xff] %v1588_v35  ;;  %v1676_v51 = vsel %vm369_vm10, %v1600_v37, %v1603_v38 }
  0x42   : > { %2879 = vst [vmem:[#allocation23_spill] sm:$0xff] %v1595_v36  ;;  %v1608_v39 = vld [vmem:[%s1411_s10 + $0xa8] sm:$0xff]  ;;  %v1611_v40 = vld [vmem:[%s1411_s10 + $0x50] sm:$0xff]  ;;  %2881 = vst [vmem:[#allocation25_spill] sm:$0xff] %v1623_v42  ;;  %p1168_p5 = pneg %p1167_p4 }
  0x43   : > { %301 = vperm.xlu1 %1152, %v1427_v3   ;;  %295 = vperm.xlu0 %1151, %v1429_v4   ;;  %v1616_v41 = vld [vmem:[%s1411_s10 + $0xf0] sm:$0xff]  ;;  %v1630_v43 = vld [vmem:[%s1411_s10 + $0x138] sm:$0xff]  ;;  %2883 = vst [vmem:[#allocation27_spill] sm:$0xff] %v1637_v44  ;;  %v1640_v45 = vld [vmem:[%s1411_s10 + $0x180] sm:$0xff]  ;;  %vm2832_vm11 = vcmp.gt.f32.partialorder %v1608_v39, %v1611_v40 }
  0x44   : > { %2880 = vst [vmem:[#allocation24_spill] sm:$0xff] %v1616_v41  ;;  %2882 = vst [vmem:[#allocation26_spill] sm:$0xff] %v1630_v43  ;;  %v1650_v47 = vld [vmem:[%s1411_s10 + $0x1c0] sm:$0xff]  ;;  %v1664_v49 = vld [vmem:[%s1411_s10 + $0x68] sm:$0xff]  ;;  %vm2770_vm12 = vcmp.gt.f32.partialorder %v1616_v41, %v1623_v42  ;;  %v1695_v56 = vsel %vm2832_vm11, %v1608_v39, %v1611_v40  ;;  %vm2740_vm13 = vcmp.gt.f32.partialorder %v1630_v43, %v1637_v44 }
  0x45   : > { %2884 = vst [vmem:[#allocation28_spill] sm:$0xff] %v1640_v45  ;;  %2885 = vst [vmem:[#allocation29_spill] sm:$0xff] %v1647_v46  ;;  %v1667_v50 = vld [vmem:[%s1411_s10 + $0x10] sm:$0xff]  ;;  %v1688_v55 = vld [vmem:[%s1411_s10 + $0x100] sm:$0xff]  ;;  %vm2741_vm14 = vcmp.gt.f32.partialorder %v1640_v45, %v1647_v46  ;;  %vm2743_vm15 = vcmp.gt.f32.partialorder %v1650_v47, %v1657_v48  ;;  %v1711_v58 = vsel %vm2770_vm12, %v1616_v41, %v1623_v42 }
  0x46   : > { %2886 = vst [vmem:[#allocation30_spill] sm:$0xff] %v1650_v47  ;;  %2887 = vst [vmem:[#allocation31_spill] sm:$0xff] %v1657_v48  ;;  %v1685_v54 = vld [vmem:[%s1411_s10 + $0xb0] sm:$0xff]  ;;  %v1700_v57 = vld [vmem:[%s1411_s10 + $0x148] sm:$0xff]  ;;  %v1721_v60 = vsel %vm2740_vm13, %v1630_v43, %v1637_v44  ;;  %v1731_v62 = vsel %vm2741_vm14, %v1640_v45, %v1647_v46  ;;  %v1742_v0 = vsel %vm2743_vm15, %v1650_v47, %v1657_v48 }
  0x47   : > { %307 = vperm.xlu1 %1152, %v1433_v5   ;;  %304 = vperm.xlu0 %1151, %v1435_v6   ;;  %2888 = vst [vmem:[#allocation32_spill] sm:$0xff] %v1688_v55  ;;  %2889 = vst [vmem:[#allocation33_spill] sm:$0xff] %v1695_v56  ;;  %v1714_v59 = vld [vmem:[%s1411_s10 + $0x190] sm:$0xff]  ;;  %v1724_v61 = vld [vmem:[%s1411_s10 + $0x1d8] sm:$0xff]  ;;  %vm371_vm13 = vcmp.gt.f32.partialorder %v1664_v49, %v1667_v50  ;;  %vm2831_vm8 = vcmp.gt.f32.partialorder %v1685_v54, %v1676_v51 }
  0x48   : > { %2890 = vst [vmem:[#allocation34_spill] sm:$0xff] %v1700_v57  ;;  %2891 = vst [vmem:[#allocation35_spill] sm:$0xff] %v1711_v58  ;;  %v1735_v63 = vld [vmem:[%s1411_s10 + $0x218] sm:$0xff]  ;;  %vm2764_vm15 = vcmp.gt.f32.partialorder %v1688_v55, %v1695_v56  ;;  %v1778_v44 = vld [vmem:[%s1411_s10 + $0xc0] sm:$0xff]  ;;  %v1788_v46 = vsel %vm2831_vm8, %v1685_v54, %v1676_v51  ;;  %vm2758_vm9 = vcmp.gt.f32.partialorder %v1700_v57, %v1711_v58 }
  0x49   : > { %2892 = vst [vmem:[#allocation36_spill] sm:$0xff] %v1714_v59  ;;  %2893 = vst [vmem:[#allocation37_spill] sm:$0xff] %v1721_v60  ;;  %vm2750_vm14 = vcmp.gt.f32.partialorder %v1735_v63, %v1742_v0  ;;  %v1781_v43 = vld [vmem:[%s1411_s10 + $0x108] sm:$0xff]  ;;  %v1793_v45 = vld [vmem:[%s1411_s10 + $0x158] sm:$0xff]  ;;  %vm2762_vm5 = vcmp.gt.f32.partialorder %v1724_v61, %v1731_v62  ;;  %v1809_v34 = vsel %vm2764_vm15, %v1688_v55, %v1695_v56 }
  0x4a   : > { %2894 = vst [vmem:[#allocation38_spill] sm:$0xff] %v1724_v61  ;;  %2895 = vst [vmem:[#allocation39_spill] sm:$0xff] %v1731_v62  ;;  %v1812_v33 = vld [vmem:[%s1411_s10 + $0x1a0] sm:$0xff]  ;;  %v1832_v48 = vld [vmem:[%s1411_s10 + $0x230] sm:$0xff]  ;;  %vm2786_vm15 = vcmp.gt.f32.partialorder %v1781_v43, %v1788_v46  ;;  %vm2780_vm12 = vcmp.gt.f32.partialorder %v1793_v45, %v1809_v34 }
  0x4b   : > { %313 = vperm.xlu1 %1152, %v1439_v7   ;;  %310 = vperm.xlu0 %1151, %v1441_v8   ;;  %2896 = vst [vmem:[#allocation40_spill] sm:$0xff] %v1735_v63  ;;  %2897 = vst [vmem:[#allocation41_spill] sm:$0xff] %v1742_v0  ;;  %v1874_v47 = vld [vmem:[%s1411_s10 + $0xc8] sm:$0xff]  ;;  %v1877_v36 = vld [vmem:[%s1411_s10 + $0x118] sm:$0xff]  ;;  %v1911_v27 = vsel %vm2780_vm12, %v1793_v45, %v1809_v34 }
  0x4c   : > { %2898 = vst [vmem:[#allocation42_spill] sm:$0xff] %v1781_v43  ;;  %2899 = vst [vmem:[#allocation43_spill] sm:$0xff] %v1788_v46  ;;  %v1904_v28 = vld [vmem:[%s1411_s10 + $0x1b0] sm:$0xff]  ;;  %v1914_v56 = vld [vmem:[%s1411_s10 + $0x1f8] sm:$0xff] }
  0x4d   : > { %2900 = vst [vmem:[#allocation44_spill] sm:$0xff] %v1793_v45  ;;  %2901 = vst [vmem:[#allocation45_spill] sm:$0xff] %v1809_v34  ;;  %v1940_v45 = vld [vmem:[%s1411_s10 + $0x90] sm:$0xff]  ;;  %v1969_v55 = vld [vmem:[%s1411_s10 + $0x120] sm:$0xff] }
  0x4e   : > { %2902 = vst [vmem:[#allocation46_spill] sm:$0xff] %v1812_v33  ;;  %2906 = vst [vmem:[#allocation50_spill] sm:$0xff] %v1832_v48  ;;  %v1996_v41 = vld [vmem:[%s1411_s10 + $0x1b8] sm:$0xff]  ;;  %v2006_v31 = vld [vmem:[%s1411_s10 + $0x208] sm:$0xff] }
  0x4f   : > { %319 = vperm.xlu1 %1152, %v1445_v9   ;;  %316 = vperm.xlu0 %1151, %v1447_v10   ;;  %2909 = vst [vmem:[#allocation53_spill] sm:$0xff] %v1874_v47  ;;  %2910 = vst [vmem:[#allocation54_spill] sm:$0xff] %v1877_v36  ;;  %v2108_v25 = vld [vmem:[%s1411_s10 + $0x260] sm:$0xff]  ;;  %v2225_v38 = vld [vmem:[%s1411_s10 + $0x150] sm:$0xff] }
  0x50   : > { %2914 = vst [vmem:[#allocation58_spill] sm:$0xff] %v1904_v28  ;;  %2915 = vst [vmem:[#allocation59_spill] sm:$0xff] %v1911_v27  ;;  %v2289_v17 = vld [vmem:[%s1411_s10 + $0x238] sm:$0xff]  ;;  %v2344_v19 = vld [vmem:[%s1411_s10 + $0x248] sm:$0xff] }
  0x51   : > { %2916 = vst [vmem:[#allocation60_spill] sm:$0xff] %v1914_v56  ;;  %2922 = vst [vmem:[#allocation66_spill] sm:$0xff] %v1969_v55  ;;  %v2387_v23 = vld [vmem:[%s1411_s10 + $0x258] sm:$0xff] }
  0x52   : > { %2926 = vst [vmem:[#allocation70_spill] sm:$0xff] %v1996_v41  ;;  %2928 = vst [vmem:[#allocation72_spill] sm:$0xff] %v2006_v31 }
  0x53   : > { %1153 = vset.pattern.permute.xlu1 %v1288_v12  ;;  %322 = vperm.xlu0 %1151, %v1451_v11   ;;  %2938 = vst [vmem:[#allocation82_spill] sm:$0xff] %v2108_v25  ;;  %2950 = vst [vmem:[#allocation93_spill] sm:$0xff] %v2387_v23 }
  0x54   : > { %337 = vperm.xlu1 %1153, %v1423_v2  }
  0x57   : > { %1154 = vset.pattern.permute.xlu0 %v1288_v12  ;;  %v2744_v12 = vmov 6  }
  0x58   : > { %343 = vperm.xlu1 %1153, %v1421_v1   ;;  %340 = vperm.xlu0 %1154, %v1429_v4  }
  0x5c   : > { %346 = vperm.xlu1 %1153, %v1427_v3   ;;  %349 = vperm.xlu0 %1154, %v1435_v6  }
  0x60   : > { %352 = vperm.xlu1 %1153, %v1433_v5   ;;  %355 = vperm.xlu0 %1154, %v1441_v8  }
  0x64   : > { %358 = vperm.xlu1 %1153, %v1439_v7   ;;  %361 = vperm.xlu0 %1154, %v1447_v10  }
  0x68   : > { %364 = vperm.xlu1 %1153, %v1445_v9   ;;  %367 = vperm.xlu0 %1154, %v1451_v11  }
  0x6c   : > { %1155 = vset.pattern.permute.xlu1 %v1289_v13  ;;  %1156 = vset.pattern.permute.xlu0 %v1289_v13  ;;  %v1752_v13 = vld [vmem:[%s1411_s10 + $0x70] sm:$0xff] }
  0x6d   : > { %415 = vperm.xlu1 %1155, %v1423_v2   ;;  %418 = vperm.xlu0 %1156, %v1429_v4  }
  0x71   : > { %421 = vperm.xlu1 %1155, %v1421_v1   ;;  %427 = vperm.xlu0 %1156, %v1435_v6  }
  0x75   : > { %424 = vperm.xlu1 %1155, %v1427_v3   ;;  %433 = vperm.xlu0 %1156, %v1441_v8  }
  0x79   : > { %430 = vperm.xlu1 %1155, %v1433_v5   ;;  %439 = vperm.xlu0 %1156, %v1447_v10  }
  0x7d   : > { %436 = vperm.xlu1 %1155, %v1439_v7   ;;  %445 = vperm.xlu0 %1156, %v1451_v11  }
  0x81   : > { %442 = vperm.xlu1 %1155, %v1445_v9   ;;  %1158 = vset.pattern.permute.xlu0 %v1290_v14 }
  0x82   : > { %496 = vperm.xlu0 %1158, %v1429_v4  }
  0x85   : > { %1157 = vset.pattern.permute.xlu1 %v1290_v14  ;;  %v1755_v14 = vld [vmem:[%s1411_s10 + $0x18] sm:$0xff] }
  0x86   : > { %493 = vperm.xlu1 %1157, %v1423_v2   ;;  %505 = vperm.xlu0 %1158, %v1435_v6  }
  0x8a   : > { %499 = vperm.xlu1 %1157, %v1421_v1   ;;  %511 = vperm.xlu0 %1158, %v1441_v8  }
  0x8e   : > { %502 = vperm.xlu1 %1157, %v1427_v3   ;;  %517 = vperm.xlu0 %1158, %v1447_v10  }
  0x92   : > { %508 = vperm.xlu1 %1157, %v1433_v5   ;;  %523 = vperm.xlu0 %1158, %v1451_v11  }
  0x96   : > { %514 = vperm.xlu1 %1157, %v1439_v7   ;;  %1160 = vset.pattern.permute.xlu0 %v1291_v15 }
  0x97   : > { %574 = vperm.xlu0 %1160, %v1429_v4  }
  0x9a   : > { %520 = vperm.xlu1 %1157, %v1445_v9  }
  0x9b   : > { %583 = vperm.xlu0 %1160, %v1435_v6  }
  0x9e   : > { %1159 = vset.pattern.permute.xlu1 %v1291_v15  ;;  %v1764_v15 = vsel %vm371_vm13, %v1664_v49, %v1667_v50  ;;  %v2292_v49 = vld [vmem:[%s1411_s10 + $0x1a8] sm:$0xff] }
  0x9f   : > { %571 = vperm.xlu1 %1159, %v1423_v2   ;;  %589 = vperm.xlu0 %1160, %v1441_v8   ;;  %2946 = vst [vmem:[#allocation89_spill] sm:$0xff] %v2292_v49 }
  0xa3   : > { %577 = vperm.xlu1 %1159, %v1421_v1   ;;  %595 = vperm.xlu0 %1160, %v1447_v10  }
  0xa7   : > { %580 = vperm.xlu1 %1159, %v1427_v3   ;;  %601 = vperm.xlu0 %1160, %v1451_v11  }
  0xab   : > { %586 = vperm.xlu1 %1159, %v1433_v5   ;;  %1162 = vset.pattern.permute.xlu0 %v1292_v16 }
  0xac   : > { %652 = vperm.xlu0 %1162, %v1429_v4  }
  0xaf   : > { %592 = vperm.xlu1 %1159, %v1439_v7  }
  0xb0   : > { %661 = vperm.xlu0 %1162, %v1435_v6  }
  0xb3   : > { %598 = vperm.xlu1 %1159, %v1445_v9  }
  0xb4   : > { %667 = vperm.xlu0 %1162, %v1441_v8  }
  0xb7   : > { %1161 = vset.pattern.permute.xlu1 %v1292_v16 }
  0xb8   : > { %649 = vperm.xlu1 %1161, %v1423_v2   ;;  %673 = vperm.xlu0 %1162, %v1447_v10  }
  0xbc   : > { %655 = vperm.xlu1 %1161, %v1421_v1   ;;  %679 = vperm.xlu0 %1162, %v1451_v11  }
  0xbe   : > { %v1680_v52 = vpop.permute.xlu1 %298  ;;  %v1682_v53 = vpop.permute.xlu0 %292 }
  0xc0   : > { %658 = vperm.xlu1 %1161, %v1427_v3   ;;  %1164 = vset.pattern.permute.xlu0 %v2744_v12 }
  0xc1   : > { %730 = vperm.xlu0 %1164, %v1429_v4   ;;  %v771_v4 = vsel %vm2750_vm14, %v1735_v63, %v1742_v0  ;;  %vm2759_vm14 = vcmp.gt.f32.partialorder %v1714_v59, %v1721_v60  ;;  %v1819_v0 = vsel %vm2758_vm9, %v1700_v57, %v1711_v58  ;;  %v1822_v63 = vld [vmem:[%s1411_s10 + $0x1e8] sm:$0xff]  ;;  %v1839_v58 = vsel %vm2762_vm5, %v1724_v61, %v1731_v62  ;;  %v1848_v57 = vld [vmem:[%s1411_s10 + $0x80] sm:$0xff] }
  0xc2   : > { %v1773_v16 = vpop.permute.xlu1 %301  ;;  %v1775_v12 = vpop.permute.xlu0 %295  ;;  %793 = vst [vmem:[%s1801_s19 + $0x8] sm:$0xff] %v771_v4  ;;  %2903 = vst [vmem:[#allocation47_spill] sm:$0xff] %v1819_v0  ;;  %v1829_v4 = vsel %vm2759_vm14, %v1714_v59, %v1721_v60  ;;  %vm372_vm9 = vcmp.gt.f32.partialorder %v1752_v13, %v1755_v14  ;;  %vm2772_vm14 = vcmp.gt.f32.partialorder %v1832_v48, %v1839_v58  ;;  %v1851_v60 = vld [vmem:[%s1411_s10 + $0x28] sm:$0xff] }
  0xc3   : > { %2904 = vst [vmem:[#allocation48_spill] sm:$0xff] %v1822_v63  ;;  %2905 = vst [vmem:[#allocation49_spill] sm:$0xff] %v1829_v4  ;;  %vm2795_vm5 = vcmp.gt.f32.partialorder %v1778_v44, %v1764_v15  ;;  %v1860_v59 = vsel %vm372_vm9, %v1752_v13, %v1755_v14  ;;  %vm2784_vm7 = vcmp.gt.f32.partialorder %v1822_v63, %v1829_v4 }
  0xc4   : > { %2907 = vst [vmem:[#allocation51_spill] sm:$0xff] %v1839_v58  ;;  %664 = vperm.xlu1 %1161, %v1433_v5   ;;  %2908 = vst [vmem:[#allocation52_spill] sm:$0xff] %v1860_v59  ;;  %v1884_v35 = vsel %vm2795_vm5, %v1778_v44, %v1764_v15  ;;  %v1931_v34 = vsel %vm2784_vm7, %v1822_v63, %v1829_v4  ;;  %vm374_vm12 = vcmp.gt.f32.partialorder %v1848_v57, %v1851_v60 }
  0xc5   : > { %739 = vperm.xlu0 %1164, %v1435_v6   ;;  %v774_v6 = vsel %vm2772_vm14, %v1832_v48, %v1839_v58  ;;  %2911 = vst [vmem:[#allocation55_spill] sm:$0xff] %v1884_v35  ;;  %v1889_v58 = vld [vmem:[%s1411_s10 + $0x160] sm:$0xff]  ;;  %vm2781_vm14 = vcmp.gt.f32.partialorder %v1812_v33, %v1819_v0  ;;  %v1901_v48 = vsel %vm2786_vm15, %v1781_v43, %v1788_v46  ;;  %2919 = vst [vmem:[#allocation63_spill] sm:$0xff] %v1931_v34  ;;  %v1966_v43 = vld [vmem:[%s1411_s10 + $0xd8] sm:$0xff] }
  0xc6   : > { %v1869_v62 = vpop.permute.xlu1 %307  ;;  %v1871_v61 = vpop.permute.xlu0 %304  ;;  %2912 = vst [vmem:[#allocation56_spill] sm:$0xff] %v1889_v58  ;;  %796 = vst [vmem:[%s1801_s19 + $0x20] sm:$0xff] %v774_v6  ;;  %v1921_v6 = vsel %vm2781_vm14, %v1812_v33, %v1819_v0  ;;  %v1924_v46 = vld [vmem:[%s1411_s10 + $0x240] sm:$0xff]  ;;  %v1943_v0 = vld [vmem:[%s1411_s10 + $0x38] sm:$0xff]  ;;  %vm2814_vm7 = vcmp.gt.f32.partialorder %v1874_v47, %v1860_v59  ;;  %v1952_v33 = vsel %vm374_vm12, %v1848_v57, %v1851_v60 }
  0xc7   : > { %2913 = vst [vmem:[#allocation57_spill] sm:$0xff] %v1901_v48  ;;  %2917 = vst [vmem:[#allocation61_spill] sm:$0xff] %v1921_v6  ;;  %vm2794_vm14 = vcmp.gt.f32.partialorder %v1924_v46, %v1931_v34  ;;  %vm2803_vm15 = vcmp.gt.f32.partialorder %v1877_v36, %v1884_v35  ;;  %v1976_v42 = vsel %vm2814_vm7, %v1874_v47, %v1860_v59  ;;  %v2061_v59 = vld [vmem:[%s1411_s10 + $0x130] sm:$0xff] }
  0xc8   : > { %2918 = vst [vmem:[#allocation62_spill] sm:$0xff] %v1924_v46  ;;  %670 = vperm.xlu1 %1161, %v1439_v7   ;;  %2920 = vst [vmem:[#allocation64_spill] sm:$0xff] %v1952_v33  ;;  %vm2802_vm4 = vcmp.gt.f32.partialorder %v1889_v58, %v1901_v48  ;;  %vm2809_vm5 = vcmp.gt.f32.partialorder %v1914_v56, %v1921_v6 }
  0xc9   : > { %745 = vperm.xlu0 %1164, %v1441_v8   ;;  %v776_v8 = vsel %vm2794_vm14, %v1924_v46, %v1931_v34  ;;  %2921 = vst [vmem:[#allocation65_spill] sm:$0xff] %v1966_v43  ;;  %2923 = vst [vmem:[#allocation67_spill] sm:$0xff] %v1976_v42  ;;  %v1981_v34 = vld [vmem:[%s1411_s10 + $0x170] sm:$0xff]  ;;  %vm2806_vm14 = vcmp.gt.f32.partialorder %v1904_v28, %v1911_v27  ;;  %v1993_v46 = vsel %vm2803_vm15, %v1877_v36, %v1884_v35 }
  0xca   : > { %v1961_v4 = vpop.permute.xlu1 %313  ;;  %v1963_v63 = vpop.permute.xlu0 %310  ;;  %2924 = vst [vmem:[#allocation68_spill] sm:$0xff] %v1981_v34  ;;  %798 = vst [vmem:[%s1801_s19 + $0x30] sm:$0xff] %v776_v8  ;;  %v2003_v32 = vsel %vm2802_vm4, %v1889_v58, %v1901_v48  ;;  %v2013_v8 = vsel %vm2806_vm14, %v1904_v28, %v1911_v27  ;;  %v2016_v35 = vld [vmem:[%s1411_s10 + $0x250] sm:$0xff]  ;;  %v2023_v36 = vsel %vm2809_vm5, %v1914_v56, %v1921_v6  ;;  %v2032_v27 = vld [vmem:[%s1411_s10 + $0xa0] sm:$0xff] }
  0xcb   : > { %2925 = vst [vmem:[#allocation69_spill] sm:$0xff] %v1993_v46  ;;  %2927 = vst [vmem:[#allocation71_spill] sm:$0xff] %v2003_v32  ;;  %vm376_vm4 = vcmp.gt.f32.partialorder %v1940_v45, %v1943_v0  ;;  %vm2816_vm15 = vcmp.gt.f32.partialorder %v2016_v35, %v2023_v36  ;;  %v2035_v28 = vld [vmem:[%s1411_s10 + $0x48] sm:$0xff]  ;;  %vm2830_vm14 = vcmp.gt.f32.partialorder %v1966_v43, %v1952_v33 }
  0xcc   : > { %2929 = vst [vmem:[#allocation73_spill] sm:$0xff] %v2013_v8  ;;  %2930 = vst [vmem:[#allocation74_spill] sm:$0xff] %v2016_v35  ;;  %676 = vperm.xlu1 %1161, %v1445_v9   ;;  %v2040_v48 = vld [vmem:[%s1411_s10 + $0xe8] sm:$0xff]  ;;  %v2047_v58 = vsel %vm376_vm4, %v1940_v45, %v1943_v0  ;;  %vm2827_vm5 = vcmp.gt.f32.partialorder %v1969_v55, %v1976_v42  ;;  %v2068_v47 = vsel %vm2830_vm14, %v1966_v43, %v1952_v33 }
  0xcd   : > { %2931 = vst [vmem:[#allocation75_spill] sm:$0xff] %v2023_v36  ;;  %751 = vperm.xlu0 %1164, %v1447_v10   ;;  %v778_v10 = vsel %vm2816_vm15, %v2016_v35, %v2023_v36  ;;  %2932 = vst [vmem:[#allocation76_spill] sm:$0xff] %v2068_v47  ;;  %vm2825_vm7 = vcmp.gt.f32.partialorder %v1981_v34, %v1993_v46  ;;  %vm2826_vm2 = vcmp.gt.f32.partialorder %v1996_v41, %v2003_v32  ;;  %v2078_v36 = vld [vmem:[%s1411_s10 + $0x210] sm:$0xff]  ;;  %v2081_v35 = vld [vmem:[%s1411_s10 + $0x178] sm:$0xff] }
  0xce   : > { %v2056_v6 = vpop.permute.xlu1 %319  ;;  %v2058_v56 = vpop.permute.xlu0 %316  ;;  %vm2829_vm15 = vcmp.gt.f32.partialorder %v2006_v31, %v2013_v8  ;;  %800 = vst [vmem:[%s1801_s19 + $0x40] sm:$0xff] %v778_v10  ;;  %2933 = vst [vmem:[#allocation77_spill] sm:$0xff] %v2078_v36  ;;  %v2088_v33 = vsel %vm2827_vm5, %v1969_v55, %v1976_v42  ;;  %v2091_v43 = vld [vmem:[%s1411_s10 + $0x1c8] sm:$0xff]  ;;  %v2098_v10 = vsel %vm2825_vm7, %v1981_v34, %v1993_v46  ;;  %v2940_v55 = vmov 6  }
  0xcf   : > { %2934 = vst [vmem:[#allocation78_spill] sm:$0xff] %v2081_v35  ;;  %2935 = vst [vmem:[#allocation79_spill] sm:$0xff] %v2088_v33  ;;  %v2105_v26 = vsel %vm2826_vm2, %v1996_v41, %v2003_v32  ;;  %v2115_v42 = vsel %vm2829_vm15, %v2006_v31, %v2013_v8  ;;  %vm378_vm7 = vcmp.gt.f32.partialorder %v2032_v27, %v2035_v28  ;;  %v2161_v8 = vld [vmem:[%s1411_s10 + $0x140] sm:$0xff] }
  0xd0   : > { %2936 = vst [vmem:[#allocation80_spill] sm:$0xff] %v2098_v10  ;;  %2937 = vst [vmem:[#allocation81_spill] sm:$0xff] %v2105_v26  ;;  %1163 = vset.pattern.permute.xlu1 %v2940_v55  ;;  %vm454_vm2 = vcmp.gt.f32.partialorder %v2040_v48, %v2047_v58  ;;  %vm2846_vm5 = vcmp.gt.f32.partialorder %v2078_v36, %v2105_v26  ;;  %v2131_v55 = vsel %vm378_vm7, %v2032_v27, %v2035_v28 }
  0xd1   : > { %2939 = vst [vmem:[#allocation83_spill] sm:$0xff] %v2115_v42  ;;  %727 = vperm.xlu1 %1163, %v1423_v2   ;;  %757 = vperm.xlu0 %1164, %v1451_v11   ;;  %v770_v46 = vsel %vm2846_vm5, %v2078_v36, %v2105_v26  ;;  %vm2845_vm15 = vcmp.gt.f32.partialorder %v2108_v25, %v2115_v42  ;;  %v2143_v11 = vld [vmem:[%s1411_s10 + $0xf8] sm:$0xff]  ;;  %v2158_v26 = vld [vmem:[%s1411_s10 + $0x220] sm:$0xff] }
  0xd2   : > { %v2140_v2 = vpop.permute.xlu0 %322  ;;  %vm530_vm14 = vcmp.gt.f32.partialorder %v2061_v59, %v2068_v47  ;;  %vm2843_vm8 = vcmp.gt.f32.partialorder %v2081_v35, %v2088_v33  ;;  %vm2844_vm11 = vcmp.gt.f32.partialorder %v2091_v43, %v2098_v10  ;;  %792 = vst [vmem:[%s1801_s19] sm:$0xff] %v770_v46  ;;  %v780_v34 = vsel %vm2845_vm15, %v2108_v25, %v2115_v42  ;;  %v2171_v46 = vld [vmem:[%s1411_s10 + $0x188] sm:$0xff]  ;;  %v2181_v25 = vld [vmem:[%s1411_s10 + $0x1d0] sm:$0xff] }
  0xd3   : > { %2941 = vst [vmem:[#allocation84_spill] sm:$0xff] %v2158_v26  ;;  %v338_v36 = vpop.permute.xlu1 %337  ;;  %v2168_v31 = vsel %vm454_vm2, %v2040_v48, %v2047_v58  ;;  %2942 = vst [vmem:[#allocation85_spill] sm:$0xff] %v2171_v46  ;;  %v2178_v42 = vsel %vm530_vm14, %v2061_v59, %v2068_v47  ;;  %v2188_v32 = vsel %vm2843_vm8, %v2081_v35, %v2088_v33  ;;  %v2235_v33 = vld [vmem:[%s1411_s10 + $0x198] sm:$0xff]  ;;  %v2245_v35 = vld [vmem:[%s1411_s10 + $0x1e0] sm:$0xff] }
  0xd4   : > { %2943 = vst [vmem:[#allocation86_spill] sm:$0xff] %v2178_v42  ;;  %802 = vst [vmem:[%s1801_s19 + $0x50] sm:$0xff] %v780_v34  ;;  %v2196_v41 = vsel %vm2844_vm11, %v2091_v43, %v2098_v10  ;;  %v2202_v47 = vsel %vm369_vm10, %v338_v36, %v1682_v53  ;;  %vm456_vm11 = vcmp.gt.f32.partialorder %v2143_v11, %v2131_v55 }
  0xd5   : > { %2944 = vst [vmem:[#allocation87_spill] sm:$0xff] %v2196_v41  ;;  %vm761_vm8 = vcmp.gt.f32.partialorder %v2158_v26, %v2196_v41  ;;  %733 = vperm.xlu1 %1163, %v1421_v1   ;;  %vm532_vm15 = vcmp.gt.f32.partialorder %v2161_v8, %v2168_v31  ;;  %vm2853_vm10 = vcmp.gt.f32.partialorder %v2171_v46, %v2178_v42  ;;  %v2222_v1 = vld [vmem:[%s1411_s10 + $0x228] sm:$0xff] }
  0xd6   : > { %v772_v34 = vsel %vm761_vm8, %v2158_v26, %v2196_v41  ;;  %vm2855_vm5 = vcmp.gt.f32.partialorder %v2181_v25, %v2188_v32  ;;  %v2232_v53 = vsel %vm456_vm11, %v2143_v11, %v2131_v55  ;;  %v2252_v41 = vsel %vm2853_vm10, %v2171_v46, %v2178_v42 }
  0xd7   : > { %794 = vst [vmem:[%s1801_s19 + $0x10] sm:$0xff] %v772_v34  ;;  %v344_v36 = vpop.permute.xlu1 %343  ;;  %v341_v37 = vpop.permute.xlu0 %340  ;;  %v2242_v34 = vsel %vm532_vm15, %v2161_v8, %v2168_v31  ;;  %v2259_v26 = vsel %vm2855_vm5, %v2181_v25, %v2188_v32 }
  0xd8   : > { %2945 = vst [vmem:[#allocation88_spill] sm:$0xff] %v2242_v34  ;;  %v2265_v10 = vsel %vm371_vm13, %v344_v36, %v1680_v52  ;;  %v2271_v42 = vsel %vm370_vm0, %v341_v37, %v1775_v12  ;;  %vm762_vm10 = vcmp.gt.f32.partialorder %v2222_v1, %v2259_v26  ;;  %vm534_vm13 = vcmp.gt.f32.partialorder %v2225_v38, %v2232_v53  ;;  %v2302_v52 = vld [vmem:[%s1411_s10 + $0x1f0] sm:$0xff] }
  0xd9   : > { %736 = vperm.xlu1 %1163, %v1427_v3   ;;  %v773_v46 = vsel %vm762_vm10, %v2222_v1, %v2259_v26  ;;  %vm2856_vm5 = vcmp.gt.f32.partialorder %v2235_v33, %v2242_v34  ;;  %vm686_vm0 = vcmp.gt.f32.partialorder %v2245_v35, %v2252_v41  ;;  %v2299_v50 = vsel %vm534_vm13, %v2225_v38, %v2232_v53 }
  0xda   : > { %795 = vst [vmem:[%s1801_s19 + $0x18] sm:$0xff] %v773_v46  ;;  %2947 = vst [vmem:[#allocation90_spill] sm:$0xff] %v2299_v50  ;;  %v2309_v12 = vsel %vm2856_vm5, %v2235_v33, %v2242_v34  ;;  %v2316_v46 = vsel %vm686_vm0, %v2245_v35, %v2252_v41 }
  0xdb   : > { %v347_v3 = vpop.permute.xlu1 %346  ;;  %v350_v18 = vpop.permute.xlu0 %349  ;;  %vm764_vm5 = vcmp.gt.f32.partialorder %v2289_v17, %v2316_v46 }
  0xdc   : > { %v2322_v36 = vsel %vm372_vm9, %v347_v3, %v1773_v16  ;;  %v2328_v37 = vsel %vm373_vm1, %v350_v18, %v1871_v61  ;;  %v775_v34 = vsel %vm764_vm5, %v2289_v17, %v2316_v46  ;;  %vm2858_vm9 = vcmp.gt.f32.partialorder %v2292_v49, %v2299_v50 }
  0xdd   : > { %742 = vperm.xlu1 %1163, %v1433_v5   ;;  %vm688_vm1 = vcmp.gt.f32.partialorder %v2302_v52, %v2309_v12  ;;  %797 = vst [vmem:[%s1801_s19 + $0x28] sm:$0xff] %v775_v34  ;;  %v2347_v5 = vld [vmem:[%s1411_s10 + $0x200] sm:$0xff]  ;;  %v2354_v13 = vsel %vm2858_vm9, %v2292_v49, %v2299_v50  ;;  %s1169_s10 = sshll.u32 %s1294_s9, 4  ;;  %s1170_s10 = int_to_ptr.vmem [resolvable:$false] %s1169_s10 }
  0xde   : > { %2948 = vst [vmem:[#allocation91_spill] sm:$0xff] %v2347_v5  ;;  %2949 = vst [vmem:[#allocation92_spill] sm:$0xff] %v2354_v13  ;;  %v2361_v14 = vsel %vm688_vm1, %v2302_v52, %v2309_v12  ;;  %s1171_s22 = scalar_lea.vmem %s1170_s10, 2816  ;;  %p1172_p6 = scmp.lt.s32.totalorder %s2422_s23, %s1170_s10 }
  0xdf   : > { %v353_v20 = vpop.permute.xlu1 %352  ;;  %v356_v61 = vpop.permute.xlu0 %355  ;;  %vm766_vm9 = vcmp.gt.f32.partialorder %v2344_v19, %v2361_v14  ;;  %p1173_p7 = scmp.lt.s32.totalorder %s1171_s22, %s1165_s7 }
  0xe0   : > { %v2367_v16 = vsel %vm374_vm12, %v353_v20, %v1869_v62  ;;  %v2373_v34 = vsel %vm375_vm3, %v356_v61, %v1963_v63  ;;  %v777_v57 = vsel %vm766_vm9, %v2344_v19, %v2361_v14  ;;  %vm690_vm12 = vcmp.gt.f32.partialorder %v2347_v5, %v2354_v13 }
  0xe1   : > { %748 = vperm.xlu1 %1163, %v1439_v7   ;;  %799 = vst [vmem:[%s1801_s19 + $0x38] sm:$0xff] %v777_v57  ;;  %v2394_v7 = vsel %vm690_vm12, %v2347_v5, %v2354_v13  ;;  %p1174_p8 = por %p1173_p7, %p1172_p6 }
  0xe2   : > { %2951 = vst [vmem:[#allocation94_spill] sm:$0xff] %v2394_v7  ;;  %vm2859_vm3 = vcmp.gt.f32.partialorder %v2387_v23, %v2394_v7 }
  0xe3   : > { %v359_v24 = vpop.permute.xlu1 %358  ;;  %v362_v60 = vpop.permute.xlu0 %361  ;;  %v779_v3 = vsel %vm2859_vm3, %v2387_v23, %v2394_v7  ;;  %p1175_p10 = pnand %p1174_p8, %p1168_p5 }
  0xe4   : > { %v398_v62 = vsel %vm376_vm4, %v359_v24, %v1961_v4  ;;  %v399_v63 = vsel %vm377_vm6, %v362_v60, %v2058_v56  ;;  %801 = vst [vmem:[%s1801_s19 + $0x48] sm:$0xff] %v779_v3  ;;  %vm2952_vm4 = vcmp.gt.f32.partialorder %v1608_v39, %v1611_v40 }
  0xe5   : > { %754 = vperm.xlu1 %1163, %v1445_v9  }
  0xe7   : > { %v365_v29 = vpop.permute.xlu1 %364  ;;  %v368_v30 = vpop.permute.xlu0 %367 }
  0xe8   : > { %v400_v9 = vsel %vm378_vm7, %v365_v29, %v2056_v6  ;;  %v401_v45 = vsel %vm2952_vm4, %v368_v30, %v2140_v2 }
  0xe9   : > { %1178 = shalt.err (!%p1175_p10)
}
  0xea   : > { %s1179_s28 = scalar_lea.hbm %s2420_s30, 1408  ;;  %s1183_s18 = scalar_lea.hbm %s2738_s2, 2816 }
  0xeb   : > { %p1180_p13 = scmp.ne.s32.totalorder %s2420_s30, %s1179_s28  ;;  %p1184_p2 = scmp.lt.u32.totalorder %s2420_s30, %s2738_s2 }
  0xec   : > { %p1185_p3 = scmp.lt.u32.totalorder %s1183_s18, %s1179_s28  ;;  %p1187_p5 = scmp.lt.u32.totalorder %s1179_s28, %s2420_s30 }
  0xed   : > { %p1181_p0 = pnand %p1180_p13, %p1369_p9 }
  0xee   : > { %p1186_p4 = por %p1185_p3, %p1184_p2 }
  0xef   : > { %p1182_p1 = pneg %p1181_p0 }
  0xf0   : > { %p1188_p6 = por %p1187_p5, %p1186_p4 }
  0xf2   : > { %p1189_p7 = pnand %p1188_p6, %p1182_p1 }
  0xf4   : > { %1192 = shalt.err (!%p1189_p7)
}
  0xf5   : > { %s1295_s4 = smov 128   ;;  %s1296_s7 = smov 8   ;;  %v416_v27 = vpop.permute.xlu1 %415  ;;  %v419_v28 = vpop.permute.xlu0 %418  ;;  %vm2953_vm6 = vcmp.gt.f32.partialorder %v1685_v54, %v1676_v51  ;;  %vm2954_vm7 = vcmp.gt.f32.partialorder %v1513_v21, %v1520_v22  ;;  %vm2955_vm4 = vcmp.gt.f32.partialorder %v1778_v44, %v1764_v15  ;;  %v2956_v6 = vld [vmem:[#allocation14_spill] sm:$0xff]  ;;  %v2957_v2 = vld [vmem:[#allocation15_spill] sm:$0xff]  ;;  %v2960_v54 = vld [vmem:[#allocation52_spill] sm:$0xff] }
  0xf6   : > { %1076 = dma.vmem_to_hbm [thread:$0]  (%p1369_p9), %s2422_s23, 1408, %s2420_s30, %s815_s5, %s1295_s4, %s1295_s4, %s1296_s7   ;;  %v469_v39 = vsel %vm2953_vm6, %v416_v27, %v2202_v47  ;;  %v470_v40 = vsel %vm2954_vm7, %v419_v28, %v2271_v42  ;;  %vm2958_vm3 = vcmp.gt.f32.partialorder %v2956_v6, %v2957_v2  ;;  %v2959_v47 = vld [vmem:[#allocation53_spill] sm:$0xff]  ;;  %v2962_v22 = vld [vmem:[#allocation18_spill] sm:$0xff]  ;;  %v2963_v42 = vld [vmem:[#allocation19_spill] sm:$0xff] }
  0xf7   : > { %vm2961_vm6 = vcmp.gt.f32.partialorder %v2959_v47, %v2960_v54  ;;  %vm2964_vm7 = vcmp.gt.f32.partialorder %v2962_v22, %v2963_v42  ;;  %v2965_v15 = vld [vmem:[#allocation65_spill] sm:$0xff]  ;;  %v2971_v27 = vld [vmem:[#allocation32_spill] sm:$0xff]  ;;  %v2974_v2 = vld [vmem:[#allocation42_spill] sm:$0xff]  ;;  %s2554_s23 = scalar_lea.vmem [#allocation6], %s1066_s24  ;;  %s2678_s9 = scalar_lea.hbm %s2739_s3, %s1062_s21 }
  0xf8   : > { %v2969_v60 = vld [vmem:[#allocation25_spill] sm:$0xff]  ;;  %v2978_v47 = vld [vmem:[#allocation55_spill] sm:$0xff]  ;;  %v2980_v42 = vld [vmem:[#allocation66_spill] sm:$0xff]  ;;  %s851_s24 = sshll.u32 %s2554_s23, 4  ;;  %s820_s10 = scalar_lea.sflag [#allocation7], %s1407_s6  ;;  %s2680_s24 = int_to_ptr.vmem [resolvable:$true] %s851_s24 }
  0xf9   : > { %v422_v56 = vpop.permute.xlu1 %421  ;;  %v428_v0 = vpop.permute.xlu0 %427  ;;  %v2981_v55 = vld [vmem:[#allocation67_spill] sm:$0xff]  ;;  %v2994_v23 = vld [vmem:[#allocation40_spill] sm:$0xff]  ;;  %v2995_v13 = vld [vmem:[#allocation41_spill] sm:$0xff]  ;;  %s1193_s22 = scalar_lea.vmem %s2680_s24, 1408  ;;  %s1297_s15 = smov [#allocation6]  }
  0xfa   : > { %v471_v4 = vsel %vm2955_vm4, %v422_v56, %v2265_v10  ;;  %v473_v18 = vsel %vm2958_vm3, %v428_v0, %v2328_v37  ;;  %v2966_v10 = vld [vmem:[#allocation64_spill] sm:$0xff]  ;;  %v2998_v49 = vld [vmem:[#allocation21_spill] sm:$0xff]  ;;  %v3077_v19 = vld [vmem:[#allocation94_spill] sm:$0xff]  ;;  %p1194_p8 = scmp.ne.s32.totalorder %s2680_s24, %s1193_s22  ;;  %s1197_s28 = sshll.u32 %s1297_s15, 4  ;;  %s1198_s28 = int_to_ptr.vmem [resolvable:$false] %s1197_s28 }
  0xfb   : > { %vm2967_vm4 = vcmp.gt.f32.partialorder %v2965_v15, %v2966_v10  ;;  %v2968_v37 = vld [vmem:[#allocation24_spill] sm:$0xff]  ;;  %v3071_v46 = vld [vmem:[#allocation89_spill] sm:$0xff]  ;;  %s1199_s21 = scalar_lea.vmem %s1198_s28, 2816  ;;  %p1200_p0 = scmp.lt.s32.totalorder %s2680_s24, %s1198_s28 }
  0xfc   : > { %vm2970_vm3 = vcmp.gt.f32.partialorder %v2968_v37, %v2969_v60  ;;  %v2997_v50 = vld [vmem:[#allocation20_spill] sm:$0xff]  ;;  %v3076_v12 = vld [vmem:[#allocation93_spill] sm:$0xff]  ;;  %p1195_p10 = pnand %p1194_p8, %p1369_p9  ;;  %p1201_p1 = scmp.lt.s32.totalorder %s1199_s21, %s1193_s22 }
  0xfd   : > { %v425_v20 = vpop.permute.xlu1 %424  ;;  %v434_v51 = vpop.permute.xlu0 %433  ;;  %v3068_v26 = vld [vmem:[#allocation88_spill] sm:$0xff] }
  0xfe   : > { %v472_v21 = vsel %vm2961_vm6, %v425_v20, %v2322_v36  ;;  %v475_v61 = vsel %vm2964_vm7, %v434_v51, %v2373_v34  ;;  %v2972_v34 = vld [vmem:[#allocation33_spill] sm:$0xff]  ;;  %v2975_v20 = vld [vmem:[#allocation43_spill] sm:$0xff]  ;;  %p1196_p13 = pneg %p1195_p10  ;;  %p1202_p2 = por %p1201_p1, %p1200_p0 }
  0xff   : > { %vm2973_vm6 = vcmp.gt.f32.partialorder %v2971_v27, %v2972_v34  ;;  %vm2976_vm7 = vcmp.gt.f32.partialorder %v2974_v2, %v2975_v20 }
 0x100   : > { %p1203_p3 = pnand %p1202_p2, %p1196_p13 }
 0x101   : > { %v431_v57 = vpop.permute.xlu1 %430  ;;  %v440_v44 = vpop.permute.xlu0 %439 }
 0x102   : > { %v474_v24 = vsel %vm2967_vm4, %v431_v57, %v2367_v16  ;;  %v2490_v3 = vsel %vm2970_vm3, %v440_v44, %v399_v63  ;;  %v2991_v44 = vld [vmem:[#allocation30_spill] sm:$0xff]  ;;  %vm2996_vm4 = vcmp.gt.f32.partialorder %v2994_v23, %v2995_v13  ;;  %vm2999_vm3 = vcmp.gt.f32.partialorder %v2997_v50, %v2998_v49  ;;  %v3007_v49 = vld [vmem:[#allocation51_spill] sm:$0xff] }
 0x105   : > { %v437_v29 = vpop.permute.xlu1 %436  ;;  %v446_v30 = vpop.permute.xlu0 %445 }
 0x106   : > { %v476_v36 = vsel %vm454_vm2, %v437_v29, %v398_v62  ;;  %v2498_v28 = vsel %vm2973_vm6, %v446_v30, %v401_v45  ;;  %v2977_v62 = vld [vmem:[#allocation54_spill] sm:$0xff] }
 0x107   : > { %vm2979_vm2 = vcmp.gt.f32.partialorder %v2977_v62, %v2978_v47  ;;  %v2986_v62 = vld [vmem:[#allocation17_spill] sm:$0xff] }
 0x109   : > { %v443_v56 = vpop.permute.xlu1 %442  ;;  %v497_v0 = vpop.permute.xlu0 %496 }
 0x10a   : > { %v478_v16 = vsel %vm456_vm11, %v443_v56, %v400_v9  ;;  %vm2982_vm11 = vcmp.gt.f32.partialorder %v2980_v42, %v2981_v55  ;;  %v2989_v42 = vld [vmem:[#allocation23_spill] sm:$0xff] }
 0x10d   : > { %v494_v6 = vpop.permute.xlu1 %493  ;;  %v506_v63 = vpop.permute.xlu0 %505 }
 0x10e   : > { %v2506_v51 = vsel %vm2976_vm7, %v494_v6, %v469_v39 }
 0x111   : > { %v500_v48 = vpop.permute.xlu1 %499  ;;  %v512_v58 = vpop.permute.xlu0 %511 }
 0x112   : > { %v2511_v45 = vsel %vm2979_vm2, %v500_v48, %v471_v4  ;;  %v2985_v48 = vld [vmem:[#allocation16_spill] sm:$0xff] }
 0x115   : > { %v503_v54 = vpop.permute.xlu1 %502  ;;  %v518_v22 = vpop.permute.xlu0 %517 }
 0x116   : > { %v2516_v11 = vsel %vm2982_vm11, %v503_v54, %v472_v21  ;;  %v2988_v54 = vld [vmem:[#allocation22_spill] sm:$0xff] }
 0x119   : > { %v509_v9 = vpop.permute.xlu1 %508  ;;  %v524_v57 = vpop.permute.xlu0 %523 }
 0x11a   : > { %v2521_v39 = vsel %vm530_vm14, %v509_v9, %v474_v24  ;;  %vm2987_vm14 = vcmp.gt.f32.partialorder %v2985_v48, %v2986_v62  ;;  %v3003_v48 = vld [vmem:[#allocation38_spill] sm:$0xff]  ;;  %v3004_v62 = vld [vmem:[#allocation39_spill] sm:$0xff] }
 0x11b   : > { %v548_v47 = vsel %vm2987_vm14, %v497_v0, %v470_v40  ;;  %v3000_v40 = vld [vmem:[#allocation28_spill] sm:$0xff]  ;;  %v3001_v0 = vld [vmem:[#allocation29_spill] sm:$0xff]  ;;  %vm3005_vm7 = vcmp.gt.f32.partialorder %v3003_v48, %v3004_v62  ;;  %v3025_v48 = vld [vmem:[#allocation47_spill] sm:$0xff] }
 0x11c   : > { %vm3002_vm6 = vcmp.gt.f32.partialorder %v3000_v40, %v3001_v0  ;;  %v3021_v0 = vld [vmem:[#allocation34_spill] sm:$0xff] }
 0x11d   : > { %v515_v15 = vpop.permute.xlu1 %514  ;;  %v575_v10 = vpop.permute.xlu0 %574 }
 0x11e   : > { %v2526_v4 = vsel %vm532_vm15, %v515_v15, %v476_v36  ;;  %vm2990_vm15 = vcmp.gt.f32.partialorder %v2988_v54, %v2989_v42  ;;  %v2992_v15 = vld [vmem:[#allocation31_spill] sm:$0xff]  ;;  %v3013_v54 = vld [vmem:[#allocation37_spill] sm:$0xff]  ;;  %v3015_v42 = vld [vmem:[#allocation48_spill] sm:$0xff] }
 0x11f   : > { %v626_v55 = vsel %vm2990_vm15, %v575_v10, %v548_v47 }
 0x121   : > { %v521_v37 = vpop.permute.xlu1 %520  ;;  %v584_v60 = vpop.permute.xlu0 %583 }
 0x122   : > { %v2531_v21 = vsel %vm534_vm13, %v521_v37, %v478_v16  ;;  %vm2993_vm13 = vcmp.gt.f32.partialorder %v2991_v44, %v2992_v15  ;;  %v3018_v15 = vld [vmem:[#allocation62_spill] sm:$0xff] }
 0x125   : > { %v572_v29 = vpop.permute.xlu1 %571  ;;  %v590_v30 = vpop.permute.xlu0 %589 }
 0x129   : > { %v578_v27 = vpop.permute.xlu1 %577  ;;  %v596_v59 = vpop.permute.xlu0 %595 }
 0x12d   : > { %v581_v24 = vpop.permute.xlu1 %580  ;;  %v602_v34 = vpop.permute.xlu0 %601 }
 0x131   : > { %v587_v56 = vpop.permute.xlu1 %586  ;;  %v653_v6 = vpop.permute.xlu0 %652 }
 0x132   : > { %v704_v37 = vsel %vm2993_vm13, %v653_v6, %v626_v55  ;;  %v3016_v55 = vld [vmem:[#allocation49_spill] sm:$0xff] }
 0x133   : > { %vm3017_vm15 = vcmp.gt.f32.partialorder %v3015_v42, %v3016_v55  ;;  %v3042_v42 = vld [vmem:[#allocation70_spill] sm:$0xff]  ;;  %v3043_v55 = vld [vmem:[#allocation71_spill] sm:$0xff] }
 0x135   : > { %v2533_v31 = vpop.permute.xlu1 %592  ;;  %v662_v8 = vpop.permute.xlu0 %661 }
 0x139   : > { %v2535_v36 = vpop.permute.xlu1 %598  ;;  %v668_v2 = vpop.permute.xlu0 %667 }
 0x13a   : > { %2984 = vst [vmem:[#allocation14_spill] sm:$0xff] %v2535_v36  ;;  %v551_v36 = vsel %vm2999_vm3, %v506_v63, %v473_v18  ;;  %v3009_v18 = vld [vmem:[#allocation26_spill] sm:$0xff]  ;;  %v3010_v63 = vld [vmem:[#allocation27_spill] sm:$0xff] }
 0x13b   : > { %v629_v10 = vsel %vm3002_vm6, %v584_v60, %v551_v36  ;;  %vm3011_vm11 = vcmp.gt.f32.partialorder %v3009_v18, %v3010_v63  ;;  %v3033_v63 = vld [vmem:[#allocation44_spill] sm:$0xff] }
 0x13c   : > { %v707_v13 = vsel %vm3005_vm7, %v662_v8, %v629_v10  ;;  %v553_v47 = vsel %vm3011_vm11, %v512_v58, %v475_v61  ;;  %v3022_v10 = vld [vmem:[#allocation35_spill] sm:$0xff]  ;;  %v3024_v58 = vld [vmem:[#allocation46_spill] sm:$0xff] }
 0x13d   : > { %v650_v20 = vpop.permute.xlu1 %649  ;;  %v674_v38 = vpop.permute.xlu0 %673  ;;  %vm3026_vm3 = vcmp.gt.f32.partialorder %v3024_v58, %v3025_v48 }
 0x141   : > { %v656_v53 = vpop.permute.xlu1 %655  ;;  %v680_v16 = vpop.permute.xlu0 %679  ;;  %v3070_v17 = vld [vmem:[#allocation14_spill] sm:$0xff] }
 0x145   : > { %v659_v9 = vpop.permute.xlu1 %658  ;;  %v731_v7 = vpop.permute.xlu0 %730 }
 0x146   : > { %v782_v5 = vsel %vm2996_vm4, %v731_v7, %v704_v37  ;;  %v3006_v7 = vld [vmem:[#allocation50_spill] sm:$0xff]  ;;  %v3019_v37 = vld [vmem:[#allocation63_spill] sm:$0xff]  ;;  %vm3023_vm4 = vcmp.gt.f32.partialorder %v3021_v0, %v3022_v10  ;;  %v3049_v0 = vld [vmem:[#allocation81_spill] sm:$0xff] }
 0x147   : > { %804 = vst [vmem:[%s2554_s23 + $0x8] sm:$0xff] %v782_v5  ;;  %vm3008_vm2 = vcmp.gt.f32.partialorder %v3006_v7, %v3007_v49  ;;  %v3012_v5 = vld [vmem:[#allocation36_spill] sm:$0xff]  ;;  %vm3020_vm13 = vcmp.gt.f32.partialorder %v3018_v15, %v3019_v37  ;;  %v555_v61 = vsel %vm3023_vm4, %v518_v22, %v2490_v3  ;;  %v3030_v49 = vld [vmem:[#allocation74_spill] sm:$0xff]  ;;  %v3034_v3 = vld [vmem:[#allocation45_spill] sm:$0xff] }
 0x148   : > { %vm3014_vm14 = vcmp.gt.f32.partialorder %v3012_v5, %v3013_v54  ;;  %v3039_v54 = vld [vmem:[#allocation58_spill] sm:$0xff]  ;;  %v3046_v15 = vld [vmem:[#allocation73_spill] sm:$0xff] }
 0x149   : > { %v665_v6 = vpop.permute.xlu1 %664  ;;  %v740_v23 = vpop.permute.xlu0 %739  ;;  %v631_v60 = vsel %vm3014_vm14, %v590_v30, %v553_v47  ;;  %v633_v30 = vsel %vm3026_vm3, %v596_v59, %v555_v61  ;;  %v3036_v59 = vld [vmem:[#allocation56_spill] sm:$0xff]  ;;  %v3037_v47 = vld [vmem:[#allocation57_spill] sm:$0xff] }
 0x14a   : > { %v785_v50 = vsel %vm3008_vm2, %v740_v23, %v707_v13  ;;  %v709_v8 = vsel %vm3017_vm15, %v668_v2, %v631_v60  ;;  %v3027_v13 = vld [vmem:[#allocation60_spill] sm:$0xff]  ;;  %v3028_v2 = vld [vmem:[#allocation61_spill] sm:$0xff]  ;;  %vm3035_vm2 = vcmp.gt.f32.partialorder %v3033_v63, %v3034_v3  ;;  %vm3038_vm11 = vcmp.gt.f32.partialorder %v3036_v59, %v3037_v47  ;;  %v3040_v60 = vld [vmem:[#allocation59_spill] sm:$0xff] }
 0x14b   : > { %807 = vst [vmem:[%s2554_s23 + $0x20] sm:$0xff] %v785_v50  ;;  %vm3029_vm6 = vcmp.gt.f32.partialorder %v3027_v13, %v3028_v2  ;;  %v3031_v50 = vld [vmem:[#allocation75_spill] sm:$0xff]  ;;  %v557_v22 = vsel %vm3035_vm2, %v524_v57, %v2498_v28  ;;  %v625_v5 = vsel %vm3038_vm11, %v572_v29, %v2506_v51  ;;  %vm3041_vm14 = vcmp.gt.f32.partialorder %v3039_v54, %v3040_v60  ;;  %v3051_v51 = vld [vmem:[#allocation82_spill] sm:$0xff] }
 0x14c   : > { %v711_v23 = vsel %vm3029_vm6, %v674_v38, %v633_v30  ;;  %vm3032_vm7 = vcmp.gt.f32.partialorder %v3030_v49, %v3031_v50  ;;  %v635_v38 = vsel %vm3041_vm14, %v602_v34, %v557_v22  ;;  %vm3044_vm15 = vcmp.gt.f32.partialorder %v3042_v42, %v3043_v55  ;;  %v3052_v29 = vld [vmem:[#allocation83_spill] sm:$0xff]  ;;  %v3054_v34 = vld [vmem:[#allocation68_spill] sm:$0xff] }
 0x14d   : > { %v671_v36 = vpop.permute.xlu1 %670  ;;  %v746_v44 = vpop.permute.xlu0 %745  ;;  %vm3053_vm3 = vcmp.gt.f32.partialorder %v3051_v51, %v3052_v29  ;;  %v3062_v49 = vld [vmem:[#allocation79_spill] sm:$0xff]  ;;  %vm3064_vm11 = vcmp.gt.f32.partialorder %v2181_v25, %v2188_v32 }
 0x14e   : > { %v787_v40 = vsel %vm3020_vm13, %v746_v44, %v709_v8  ;;  %v703_v8 = vsel %vm3044_vm15, %v650_v20, %v625_v5  ;;  %v3045_v44 = vld [vmem:[#allocation72_spill] sm:$0xff]  ;;  %v3055_v20 = vld [vmem:[#allocation69_spill] sm:$0xff] }
 0x14f   : > { %809 = vst [vmem:[%s2554_s23 + $0x30] sm:$0xff] %v787_v40  ;;  %vm3047_vm13 = vcmp.gt.f32.partialorder %v3045_v44, %v3046_v15  ;;  %v3048_v40 = vld [vmem:[#allocation77_spill] sm:$0xff]  ;;  %vm3056_vm6 = vcmp.gt.f32.partialorder %v3054_v34, %v3055_v20 }
 0x150   : > { %v713_v37 = vsel %vm3047_vm13, %v680_v16, %v635_v38  ;;  %vm3050_vm4 = vcmp.gt.f32.partialorder %v3048_v40, %v3049_v0  ;;  %v627_v58 = vsel %vm3056_vm6, %v578_v27, %v2511_v45  ;;  %v3057_v16 = vld [vmem:[#allocation80_spill] sm:$0xff] }
 0x151   : > { %v677_v62 = vpop.permute.xlu1 %676  ;;  %v752_v7 = vpop.permute.xlu0 %751 }
 0x152   : > { %v789_v18 = vsel %vm3032_vm7, %v752_v7, %v711_v23  ;;  %vm3058_vm7 = vcmp.gt.f32.partialorder %v2091_v43, %v3057_v16  ;;  %v3061_v7 = vld [vmem:[#allocation78_spill] sm:$0xff] }
 0x153   : > { %811 = vst [vmem:[%s2554_s23 + $0x40] sm:$0xff] %v789_v18  ;;  %v705_v48 = vsel %vm3058_vm7, %v656_v53, %v627_v58  ;;  %vm3063_vm2 = vcmp.gt.f32.partialorder %v3061_v7, %v3062_v49  ;;  %v3065_v53 = vld [vmem:[#allocation85_spill] sm:$0xff]  ;;  %v3066_v18 = vld [vmem:[#allocation86_spill] sm:$0xff] }
 0x154   : > { %v628_v50 = vsel %vm3063_vm2, %v581_v24, %v2516_v11 }
 0x155   : > { %v728_v28 = vpop.permute.xlu1 %727  ;;  %v758_v57 = vpop.permute.xlu0 %757  ;;  %v706_v45 = vsel %vm3064_vm11, %v659_v9, %v628_v50 }
 0x156   : > { %v781_v10 = vsel %vm3050_vm4, %v728_v28, %v703_v8  ;;  %v791_v61 = vsel %vm3053_vm3, %v758_v57, %v713_v37 }
 0x157   : > { %803 = vst [vmem:[%s2554_s23] sm:$0xff] %v781_v10  ;;  %813 = vst [vmem:[%s2554_s23 + $0x50] sm:$0xff] %v791_v61 }
 0x159   : > { %v734_v30 = vpop.permute.xlu1 %733 }
 0x15a   : > { %v783_v23 = vsel %vm761_vm8, %v734_v30, %v705_v48  ;;  %vm3067_vm8 = vcmp.gt.f32.partialorder %v3065_v53, %v3066_v18 }
 0x15b   : > { %805 = vst [vmem:[%s2554_s23 + $0x10] sm:$0xff] %v783_v23  ;;  %v630_v63 = vsel %vm3067_vm8, %v587_v56, %v2521_v39  ;;  %v3072_v39 = vld [vmem:[#allocation90_spill] sm:$0xff] }
 0x15c   : > { %v708_v11 = vsel %vm686_vm0, %v665_v6, %v630_v63  ;;  %vm3078_vm0 = vcmp.gt.f32.partialorder %v3076_v12, %v3077_v19 }
 0x15d   : > { %v737_v27 = vpop.permute.xlu1 %736 }
 0x15e   : > { %v784_v43 = vsel %vm762_vm10, %v737_v27, %v706_v45  ;;  %vm3069_vm10 = vcmp.gt.f32.partialorder %v2235_v33, %v3068_v26 }
 0x15f   : > { %806 = vst [vmem:[%s2554_s23 + $0x18] sm:$0xff] %v784_v43  ;;  %v632_v32 = vsel %vm3069_vm10, %v2533_v31, %v2526_v4 }
 0x160   : > { %v710_v35 = vsel %vm688_vm1, %v671_v36, %v632_v32 }
 0x161   : > { %v743_v24 = vpop.permute.xlu1 %742 }
 0x162   : > { %v786_v25 = vsel %vm764_vm5, %v743_v24, %v708_v11  ;;  %vm3073_vm5 = vcmp.gt.f32.partialorder %v3071_v46, %v3072_v39 }
 0x163   : > { %808 = vst [vmem:[%s2554_s23 + $0x28] sm:$0xff] %v786_v25  ;;  %v634_v56 = vsel %vm3073_vm5, %v3070_v17, %v2531_v21 }
 0x164   : > { %v712_v31 = vsel %vm690_vm12, %v677_v62, %v634_v56 }
 0x165   : > { %v749_v41 = vpop.permute.xlu1 %748 }
 0x166   : > { %v788_v1 = vsel %vm766_vm9, %v749_v41, %v710_v35 }
 0x167   : > { %810 = vst [vmem:[%s2554_s23 + $0x38] sm:$0xff] %v788_v1 }
 0x169   : > { %v755_v52 = vpop.permute.xlu1 %754 }
 0x16a   : > { %v790_v14 = vsel %vm3078_vm0, %v755_v52, %v712_v31 }
 0x16b   : > { %812 = vst [vmem:[%s2554_s23 + $0x48] sm:$0xff] %v790_v14 }
 0x16c   : > { %1206 = shalt.err (!%p1203_p3)
}
 0x16d   : > { %s1207_s8 = scalar_lea.hbm %s2678_s9, 1408  ;;  %s1211_s19 = scalar_lea.hbm %s2739_s3, 2816 }
 0x16e   : > { %p1208_p4 = scmp.ne.s32.totalorder %s2678_s9, %s1207_s8  ;;  %p1212_p7 = scmp.lt.u32.totalorder %s2678_s9, %s2739_s3 }
 0x16f   : > { %p1213_p8 = scmp.lt.u32.totalorder %s1211_s19, %s1207_s8  ;;  %p1215_p13 = scmp.lt.u32.totalorder %s1207_s8, %s2678_s9 }
 0x170   : > { %p1209_p5 = pnand %p1208_p4, %p1369_p9 }
 0x171   : > { %p1214_p10 = por %p1213_p8, %p1212_p7 }
 0x172   : > { %p1210_p6 = pneg %p1209_p5 }
 0x173   : > { %p1216_p0 = por %p1215_p13, %p1214_p10 }
 0x175   : > { %p1217_p1 = pnand %p1216_p0, %p1210_p6 }
 0x177   : > { %1220 = shalt.err (!%p1217_p1)
}
 0x178   : > { %1077 = dma.vmem_to_hbm [thread:$0]  (%p1369_p9), %s2680_s24, 1408, %s2678_s9, %s820_s10, %s1295_s4, %s1295_s4, %s1296_s7  }
 0x179 PF: > { %s866_s30 = sand.u32 1, %s1259_s12   ;;  %p1081_p2 = pnand %p985_p12, %p1376_p11 }
 0x17a   : > { %s867_s5 = scalar_lea.sflag [#allocation4], %s866_s30 }
 0x17b   : > { %1250 = dma.done.wait (!%p1081_p2), %s867_s5, 1408  }
 0x17c   : > { %1252 = vsyncadd (!%p1081_p2), %s867_s5, 4294965888  ;;  %s876_s25 = scalar_lea.sflag [#allocation7], %s866_s30 }
 0x17d   : > { %1254 = dma.done.wait (!%p1081_p2), %s876_s25, 1408  }
 0x17e   : > { %1256 = vsyncadd (!%p1081_p2), %s876_s25, 4294965888  ;;  %s23_s17 = sadd.s32 1, %s1279_s17   ;;  %s3079_s12 = smov %s1263_s13 }
 0x17f   : > { %p20_p3 = scmp.ge.s32.totalorder %s23_s17, 4   ;;  %s3080_s13 = smov %s1267_s14 }
 0x180   : > { %s3081_s14 = smov %s1374_s26  ;;  %s3082_s15 = smov %s1275_s16 }
 0x181   : > { %s3083_s16 = smov %s3085_s20  ;;  %22 = sbr.rel (!%p20_p3) target bundleno = 8 (0x8), region = 104 }
 0x188   :  { %881 = vsyncpa [#allocation3], 1 }
 0x189   :  { %883 = vsyncpa [#allocation3 + $0x1], 1 }
 0x18a   :  { %884 = vsyncpa [#allocation4], 1 }
 0x18b   :  { %886 = vsyncpa [#allocation4 + $0x1], 1 }
 0x18c   :  { %887 = vsyncpa [#allocation7], 1 }
 0x18d   :  { %889 = vsyncpa [#allocation7 + $0x1], 1 }

</bundles_post_ra>
